<compile_context>
chip_gen: v5e
topology: v5e:2x2
jax: 0.10.0
libtpu: 0.0.40
codegen_flags: <defaults>
</compile_context>

<pallas_src>
import numpy as np
import jax
import jax.numpy as jnp
from jax.experimental import pallas as pl
from jax.experimental.pallas import tpu as pltpu


def _fused_convt1x1_nearest_kernel(bias_ref, x2_ref, m_ref, o_ref):
    # bias_ref : (out_c,)               f32 SMEM
    # x2_ref   : (B*H, in_c*W)          f32 VMEM   x permuted so rows=(b,h), cols=(i,w)
    # m_ref    : (in_c*W, out_c*fh*OW)  f32 VMEM   weight (x) one-hot nearest matrix
    # o_ref    : (B, out_c, H, fh*OW)   f32 VMEM   lane-dense fused output view
    B, out_c, H, L = o_ref.shape

    # Single MXU pass sequence: channel mix (weights) + 4x nearest upsample (one-hot)
    # are both encoded in m_ref.  HIGHEST keeps the f32 decomposition exact enough to
    # match the elementwise-f32 reference at 1e-5.
    r = jnp.dot(x2_ref[...], m_ref[...],
                preferred_element_type=jnp.float32,
                precision=jax.lax.Precision.HIGHEST)          # (B*H, out_c*L)

    for b in range(B):                                        # B*out_c = 8 static stores
        for o in range(out_c):
            # 128-aligned column slice (L = fh*OW is a multiple of 128) and
            # 8-aligned row slice (H = 16): unmasked vst of the (H, L) tile.
            o_ref[b, o, :, :] = r[b * H:(b + 1) * H, o * L:(o + 1) * L] + bias_ref[o]


def _nearest_upsample_matrix(H, W, OH, OW):
    """One-hot U:(W, fh*OW) with U[w,c]=1 iff nearest source column of c is w."""
    fh, fw = OH // H, OW // W
    cols = np.arange(fh * OW)
    src_w = (cols % OW) // fw                      # == floor(ow * W / OW) for integer fw
    u = np.zeros((W, fh * OW), dtype=np.float32)
    u[src_w, cols] = 1.0
    return u


def output_transform_forward(x, weight, bias, dim):
    """
    x      : (B, in_c, H, W) float32
    weight : (in_c, out_c, 1, 1) float32   (ConvTranspose2d weight layout)
    bias   : (out_c,) float32
    dim    : int or (OH, OW) target size for F.interpolate(..., mode='nearest')
    returns: (B, out_c, OH, OW) float32
    """
    B, in_c, H, W = x.shape
    out_c = weight.shape[1]
    OH, OW = (dim, dim) if isinstance(dim, int) else tuple(dim)
    # TODO(synk): only exact integer nearest scale factors are fused in-kernel; general
    # (non-integer) factors would need a per-row-count upsample matrix.
    assert OH % H == 0 and OW % W == 0, (H, W, OH, OW)
    fh, fw = OH // H, OW // W
    L = fh * OW

    wmat = weight.reshape(in_c, out_c).astype(jnp.float32)
    bias = bias.astype(jnp.float32)
    u = jnp.asarray(_nearest_upsample_matrix(H, W, OH, OW))           # (W, L) {0,1}

    # Combined matrix: M[i*W + w, o*L + c] = weight[i, o] * U[w, c]
    m = (wmat[:, None, :, None] * u[None, :, None, :]).reshape(in_c * W, out_c * L)
    # x permuted/reshaped so the matmul rows index (b, h) and the contraction is (i, w)
    x2 = x.astype(jnp.float32).transpose(0, 2, 1, 3).reshape(B * H, in_c * W)

    flops = (2 * (B * H) * (in_c * W) * (out_c * L)   # fused mix + upsample matmul
             + B * out_c * H * L)                     # bias add
    bytes_accessed = 4 * (x2.size + m.size + bias.size + B * out_c * H * L)

    out_view = pl.pallas_call(
        _fused_convt1x1_nearest_kernel,
        out_shape=jax.ShapeDtypeStruct((B, out_c, H, L), jnp.float32),
        grid=(1,),
        in_specs=[
            pl.BlockSpec(memory_space=pltpu.MemorySpace.SMEM),              # bias
            pl.BlockSpec((B * H, in_c * W), lambda i: (0, 0)),              # x2
            pl.BlockSpec((in_c * W, out_c * L), lambda i: (0, 0)),          # combined M
        ],
        out_specs=pl.BlockSpec((B, out_c, H, L), lambda i: (0, 0, 0, 0)),
        compiler_params=pltpu.CompilerParams(dimension_semantics=("arbitrary",)),
        cost_estimate=pl.CostEstimate(flops=int(flops), transcendentals=0,
                                      bytes_accessed=int(bytes_accessed)),
    )(bias, x2, m)

    # contiguous (metadata-only) reshape back to the NCHW spatial layout
    return out_view.reshape(B, out_c, OH, OW)


if __name__ == "__main__":
    key = jax.random.PRNGKey(0)
    kx, kw, kb = jax.random.split(key, 3)

    B, in_c, out_c = 2, 4, 4
    H = W = 16
    dim = (64, 64)

    x = jax.random.normal(kx, (B, in_c, H, W), dtype=jnp.float32)
    weight = 0.1 * jax.random.normal(kw, (in_c, out_c, 1, 1), dtype=jnp.float32)
    bias = 0.1 * jax.random.normal(kb, (out_c,), dtype=jnp.float32)

    out = output_transform_forward(x, weight, bias, dim)
    out = jax.block_until_ready(out)
    assert out.shape == (B, out_c, dim[0], dim[1]), out.shape

    # Pure-JAX reference of the same forward pass (ConvTranspose2d 1x1 + nearest resize),
    # computed with exact elementwise f32 math.
    wmat = weight.reshape(in_c, out_c)
    y_ref = (x[:, :, None, :, :] * wmat[None, :, :, None, None]).sum(axis=1)
    y_ref = y_ref + bias[None, :, None, None]
    src_h = (jnp.arange(dim[0]) * H) // dim[0]       # PyTorch nearest: floor(dst*in/out)
    src_w = (jnp.arange(dim[1]) * W) // dim[1]
    y_ref = y_ref[:, :, src_h, :][:, :, :, src_w]

    np.testing.assert_allclose(np.asarray(out), np.asarray(y_ref), rtol=1e-5, atol=1e-5)
    print("KERNEL_OK")
</pallas_src>

<mosaic_0001>
module attributes {stable_mosaic.version = 11 : i64} {
  func.func @_fused_convt1x1_nearest_kernel(%arg0: i32, %arg1: memref<4xf32, #tpu.memory_space<smem>>, %arg2: memref<32x64xf32, #tpu.memory_space<vmem>>, %arg3: memref<64x1024xf32, #tpu.memory_space<vmem>>, %arg4: memref<2x4x16x256xf32, #tpu.memory_space<vmem>>) attributes {dimension_semantics = [#tpu.dimension_semantics<arbitrary>], iteration_bounds = array<i64: 1>, scalar_prefetch = 0 : i64, scratch_operands = 0 : i64, tpu.core_type = #tpu.core_type<tc>, window_params = [{transform_indices = @transform_0, window_bounds = array<i64: 4>}, {pipeline_mode = #tpu.pipeline_mode<synchronous>, transform_indices = @transform_1, window_bounds = array<i64: 32, 64>}, {pipeline_mode = #tpu.pipeline_mode<synchronous>, transform_indices = @transform_2, window_bounds = array<i64: 64, 1024>}, {pipeline_mode = #tpu.pipeline_mode<synchronous>, transform_indices = @transform_3, window_bounds = array<i64: 2, 4, 16, 256>}]} {
    %c0 = arith.constant 0 : index
    %c0_0 = arith.constant 0 : index
    %0 = vector.load %arg2[%c0, %c0_0] : memref<32x64xf32, #tpu.memory_space<vmem>>, vector<32x64xf32>
    %c0_1 = arith.constant 0 : index
    %c0_2 = arith.constant 0 : index
    %1 = vector.load %arg3[%c0_1, %c0_2] : memref<64x1024xf32, #tpu.memory_space<vmem>>, vector<64x1024xf32>
    %cst = arith.constant dense<0.000000e+00> : vector<32x1024xf32>
    %2 = tpu.matmul %0, %1, %cst {dimension_numbers = #tpu.dot_dimension_numbers<[1], [0], [0], [1], [0, 0, 1, 1], [], []>, precision = #tpu.contract_precision<fp32>} : vector<32x64xf32>, vector<64x1024xf32>, vector<32x1024xf32> -> vector<32x1024xf32>
    %3 = vector.extract_strided_slice %2 {offsets = [0, 0], sizes = [16, 256], strides = [1, 1]} : vector<32x1024xf32> to vector<16x256xf32>
    %c0_3 = arith.constant 0 : index
    %4 = memref.load %arg1[%c0_3] : memref<4xf32, #tpu.memory_space<smem>>
    %5 = vector.broadcast %4 : f32 to vector<16x256xf32>
    %6 = arith.addf %3, %5 : vector<16x256xf32>
    %c0_4 = arith.constant 0 : index
    %c0_5 = arith.constant 0 : index
    %c0_6 = arith.constant 0 : index
    %c0_7 = arith.constant 0 : index
    %7 = vector.load %arg4[%c0_4, %c0_5, %c0_6, %c0_7] : memref<2x4x16x256xf32, #tpu.memory_space<vmem>>, vector<1x1x16x256xf32>
    %8 = vector.shape_cast %7 : vector<1x1x16x256xf32> to vector<16x256xf32>
    %9 = vector.shape_cast %6 : vector<16x256xf32> to vector<1x1x16x256xf32>
    tpu.vector_store %arg4[%c0_4, %c0_5, %c0_6, %c0_7], %9 {strides = array<i32>} : memref<2x4x16x256xf32, #tpu.memory_space<vmem>>, vector<1x1x16x256xf32>,
    %10 = vector.extract_strided_slice %2 {offsets = [0, 256], sizes = [16, 256], strides = [1, 1]} : vector<32x1024xf32> to vector<16x256xf32>
    %c1 = arith.constant 1 : index
    %11 = memref.load %arg1[%c1] : memref<4xf32, #tpu.memory_space<smem>>
    %12 = vector.broadcast %11 : f32 to vector<16x256xf32>
    %13 = arith.addf %10, %12 : vector<16x256xf32>
    %c0_8 = arith.constant 0 : index
    %c1_9 = arith.constant 1 : index
    %c0_10 = arith.constant 0 : index
    %c0_11 = arith.constant 0 : index
    %14 = vector.load %arg4[%c0_8, %c1_9, %c0_10, %c0_11] : memref<2x4x16x256xf32, #tpu.memory_space<vmem>>, vector<1x1x16x256xf32>
    %15 = vector.shape_cast %14 : vector<1x1x16x256xf32> to vector<16x256xf32>
    %16 = vector.shape_cast %13 : vector<16x256xf32> to vector<1x1x16x256xf32>
    tpu.vector_store %arg4[%c0_8, %c1_9, %c0_10, %c0_11], %16 {strides = array<i32>} : memref<2x4x16x256xf32, #tpu.memory_space<vmem>>, vector<1x1x16x256xf32>,
    %17 = vector.extract_strided_slice %2 {offsets = [0, 512], sizes = [16, 256], strides = [1, 1]} : vector<32x1024xf32> to vector<16x256xf32>
    %c2 = arith.constant 2 : index
    %18 = memref.load %arg1[%c2] : memref<4xf32, #tpu.memory_space<smem>>
    %19 = vector.broadcast %18 : f32 to vector<16x256xf32>
    %20 = arith.addf %17, %19 : vector<16x256xf32>
    %c0_12 = arith.constant 0 : index
    %c2_13 = arith.constant 2 : index
    %c0_14 = arith.constant 0 : index
    %c0_15 = arith.constant 0 : index
    %21 = vector.load %arg4[%c0_12, %c2_13, %c0_14, %c0_15] : memref<2x4x16x256xf32, #tpu.memory_space<vmem>>, vector<1x1x16x256xf32>
    %22 = vector.shape_cast %21 : vector<1x1x16x256xf32> to vector<16x256xf32>
    %23 = vector.shape_cast %20 : vector<16x256xf32> to vector<1x1x16x256xf32>
    tpu.vector_store %arg4[%c0_12, %c2_13, %c0_14, %c0_15], %23 {strides = array<i32>} : memref<2x4x16x256xf32, #tpu.memory_space<vmem>>, vector<1x1x16x256xf32>,
    %24 = vector.extract_strided_slice %2 {offsets = [0, 768], sizes = [16, 256], strides = [1, 1]} : vector<32x1024xf32> to vector<16x256xf32>
    %c3 = arith.constant 3 : index
    %25 = memref.load %arg1[%c3] : memref<4xf32, #tpu.memory_space<smem>>
    %26 = vector.broadcast %25 : f32 to vector<16x256xf32>
    %27 = arith.addf %24, %26 : vector<16x256xf32>
    %c0_16 = arith.constant 0 : index
    %c3_17 = arith.constant 3 : index
    %c0_18 = arith.constant 0 : index
    %c0_19 = arith.constant 0 : index
    %28 = vector.load %arg4[%c0_16, %c3_17, %c0_18, %c0_19] : memref<2x4x16x256xf32, #tpu.memory_space<vmem>>, vector<1x1x16x256xf32>
    %29 = vector.shape_cast %28 : vector<1x1x16x256xf32> to vector<16x256xf32>
    %30 = vector.shape_cast %27 : vector<16x256xf32> to vector<1x1x16x256xf32>
    tpu.vector_store %arg4[%c0_16, %c3_17, %c0_18, %c0_19], %30 {strides = array<i32>} : memref<2x4x16x256xf32, #tpu.memory_space<vmem>>, vector<1x1x16x256xf32>,
    %31 = vector.extract_strided_slice %2 {offsets = [16, 0], sizes = [16, 256], strides = [1, 1]} : vector<32x1024xf32> to vector<16x256xf32>
    %c0_20 = arith.constant 0 : index
    %32 = memref.load %arg1[%c0_20] : memref<4xf32, #tpu.memory_space<smem>>
    %33 = vector.broadcast %32 : f32 to vector<16x256xf32>
    %34 = arith.addf %31, %33 : vector<16x256xf32>
    %c1_21 = arith.constant 1 : index
    %c0_22 = arith.constant 0 : index
    %c0_23 = arith.constant 0 : index
    %c0_24 = arith.constant 0 : index
    %35 = vector.load %arg4[%c1_21, %c0_22, %c0_23, %c0_24] : memref<2x4x16x256xf32, #tpu.memory_space<vmem>>, vector<1x1x16x256xf32>
    %36 = vector.shape_cast %35 : vector<1x1x16x256xf32> to vector<16x256xf32>
    %37 = vector.shape_cast %34 : vector<16x256xf32> to vector<1x1x16x256xf32>
    tpu.vector_store %arg4[%c1_21, %c0_22, %c0_23, %c0_24], %37 {strides = array<i32>} : memref<2x4x16x256xf32, #tpu.memory_space<vmem>>, vector<1x1x16x256xf32>,
    %38 = vector.extract_strided_slice %2 {offsets = [16, 256], sizes = [16, 256], strides = [1, 1]} : vector<32x1024xf32> to vector<16x256xf32>
    %c1_25 = arith.constant 1 : index
    %39 = memref.load %arg1[%c1_25] : memref<4xf32, #tpu.memory_space<smem>>
    %40 = vector.broadcast %39 : f32 to vector<16x256xf32>
    %41 = arith.addf %38, %40 : vector<16x256xf32>
    %c1_26 = arith.constant 1 : index
    %c1_27 = arith.constant 1 : index
    %c0_28 = arith.constant 0 : index
    %c0_29 = arith.constant 0 : index
    %42 = vector.load %arg4[%c1_26, %c1_27, %c0_28, %c0_29] : memref<2x4x16x256xf32, #tpu.memory_space<vmem>>, vector<1x1x16x256xf32>
    %43 = vector.shape_cast %42 : vector<1x1x16x256xf32> to vector<16x256xf32>
    %44 = vector.shape_cast %41 : vector<16x256xf32> to vector<1x1x16x256xf32>
    tpu.vector_store %arg4[%c1_26, %c1_27, %c0_28, %c0_29], %44 {strides = array<i32>} : memref<2x4x16x256xf32, #tpu.memory_space<vmem>>, vector<1x1x16x256xf32>,
    %45 = vector.extract_strided_slice %2 {offsets = [16, 512], sizes = [16, 256], strides = [1, 1]} : vector<32x1024xf32> to vector<16x256xf32>
    %c2_30 = arith.constant 2 : index
    %46 = memref.load %arg1[%c2_30] : memref<4xf32, #tpu.memory_space<smem>>
    %47 = vector.broadcast %46 : f32 to vector<16x256xf32>
    %48 = arith.addf %45, %47 : vector<16x256xf32>
    %c1_31 = arith.constant 1 : index
    %c2_32 = arith.constant 2 : index
    %c0_33 = arith.constant 0 : index
    %c0_34 = arith.constant 0 : index
    %49 = vector.load %arg4[%c1_31, %c2_32, %c0_33, %c0_34] : memref<2x4x16x256xf32, #tpu.memory_space<vmem>>, vector<1x1x16x256xf32>
    %50 = vector.shape_cast %49 : vector<1x1x16x256xf32> to vector<16x256xf32>
    %51 = vector.shape_cast %48 : vector<16x256xf32> to vector<1x1x16x256xf32>
    tpu.vector_store %arg4[%c1_31, %c2_32, %c0_33, %c0_34], %51 {strides = array<i32>} : memref<2x4x16x256xf32, #tpu.memory_space<vmem>>, vector<1x1x16x256xf32>,
    %52 = vector.extract_strided_slice %2 {offsets = [16, 768], sizes = [16, 256], strides = [1, 1]} : vector<32x1024xf32> to vector<16x256xf32>
    %c3_35 = arith.constant 3 : index
    %53 = memref.load %arg1[%c3_35] : memref<4xf32, #tpu.memory_space<smem>>
    %54 = vector.broadcast %53 : f32 to vector<16x256xf32>
    %55 = arith.addf %52, %54 : vector<16x256xf32>
    %c1_36 = arith.constant 1 : index
    %c3_37 = arith.constant 3 : index
    %c0_38 = arith.constant 0 : index
    %c0_39 = arith.constant 0 : index
    %56 = vector.load %arg4[%c1_36, %c3_37, %c0_38, %c0_39] : memref<2x4x16x256xf32, #tpu.memory_space<vmem>>, vector<1x1x16x256xf32>
    %57 = vector.shape_cast %56 : vector<1x1x16x256xf32> to vector<16x256xf32>
    %58 = vector.shape_cast %55 : vector<16x256xf32> to vector<1x1x16x256xf32>
    tpu.vector_store %arg4[%c1_36, %c3_37, %c0_38, %c0_39], %58 {strides = array<i32>} : memref<2x4x16x256xf32, #tpu.memory_space<vmem>>, vector<1x1x16x256xf32>,
    return
  }
  func.func @transform_0(%arg0: i32) -> i32 {
    %c0_i32 = arith.constant 0 : i32
    %c0_i32_0 = arith.constant 0 : i32
    return %c0_i32 : i32
  }
  func.func @transform_1(%arg0: i32) -> (i32, i32) {
    %c0_i32 = arith.constant 0 : i32
    %c0_i32_0 = arith.constant 0 : i32
    %c0_i32_1 = arith.constant 0 : i32
    return %c0_i32, %c0_i32_0 : i32, i32
  }
  func.func @transform_2(%arg0: i32) -> (i32, i32) {
    %c0_i32 = arith.constant 0 : i32
    %c0_i32_0 = arith.constant 0 : i32
    %c0_i32_1 = arith.constant 0 : i32
    return %c0_i32, %c0_i32_0 : i32, i32
  }
  func.func @transform_3(%arg0: i32) -> (i32, i32, i32, i32) {
    %c0_i32 = arith.constant 0 : i32
    %c0_i32_0 = arith.constant 0 : i32
    %c0_i32_1 = arith.constant 0 : i32
    %c0_i32_2 = arith.constant 0 : i32
    %c0_i32_3 = arith.constant 0 : i32
    return %c0_i32, %c0_i32_0, %c0_i32_1, %c0_i32_2 : i32, i32, i32, i32
  }
}

</mosaic_0001>

<bundles_post_ra>
// kernel: tpu_custom_call.1
= control target key start
LH: loop header
LB: loop body
LE: loop exit
PB: predicated region body
PF: predicated region fallthrough
CT: control target
= control target key end

     0   :  { %8 = vsyncpa [#allocation5], 0  ;;  %s4403_s0 = inlined_call_operand.hbm [shape: f32[4], index: 0, kind: input, shape index: {}]   ;;  %s4404_s1 = inlined_call_operand.hbm [shape: f32[32,64], index: 1, kind: input, shape index: {}]   ;;  %s4405_s2 = inlined_call_operand.hbm [shape: f32[64,1024], index: 2, kind: input, shape index: {}]   ;;  %s4406_s3 = inlined_call_operand.hbm [shape: f32[2,4,16,256], index: 3, kind: output, shape index: {}]  }
   0x1   :  { %9 = vsyncpa [#allocation3], 0 }
   0x2   :  { %10 = vsyncpa [#allocation8], 0 }
   0x3   :  { %11 = vsyncpa [#allocation4], 0  ;;  %s17_s14 = sshll.u32 %s4403_s0, 4  ;;  %s25_s17 = sshll.u32 %s4404_s1, 4  ;;  %s18_s14 = int_to_ptr.hbm [resolvable:$true] %s17_s14  ;;  %s26_s17 = int_to_ptr.hbm [resolvable:$true] %s25_s17 }
   0x4   :  { %s2997_s18 = smov [#allocation2]   ;;  %s2998_s19 = smov [#allocation6]  }
   0x5   :  { %20 = dma.hbm_to_smem %s18_s14, 16, %s2997_s18, [#allocation5]  }
   0x6   :  { %s27_s20 = sshll.u32 %s2998_s19, 4  ;;  %s2999_s21 = smov 128   ;;  %s28_s20 = int_to_ptr.vmem [resolvable:$true] %s27_s20 }
   0x7   :  { %s3000_s22 = smov 8   ;;  %s38_s25 = sshll.u32 %s4405_s2, 4  ;;  %s39_s25 = int_to_ptr.hbm [resolvable:$true] %s38_s25 }
   0x8   :  { %33 = dma.hbm_to_vmem [thread:$0]  %s26_s17, 512, %s28_s20, [#allocation3], %s2999_s21, %s2999_s21, %s3000_s22  }
   0x9   :  { %s3001_s0 = smov [#allocation7]   ;;  %s3002_s27 = smov 1024  }
   0xa   :  { %s40_s26 = sshll.u32 %s3001_s0, 4  ;;  %s3003_s28 = smov 64   ;;  %s41_s26 = int_to_ptr.vmem [resolvable:$true] %s40_s26 }
   0xb   :  { %46 = dma.hbm_to_vmem [thread:$0]  %s39_s25, 8192, %s41_s26, [#allocation8], %s3002_s27, %s3002_s27, %s3003_s28  }
   0xc   :  { %2989 = dma.done.wait [#allocation5], 16  }
   0xd   :  { %2990 = vsyncadd [#allocation5], 4294967280 }
   0xe   :  { %2991 = dma.done.wait [#allocation3], 512  }
   0xf   :  { %2992 = vsyncadd [#allocation3], 4294966784 }
  0x10   :  { %2993 = dma.done.wait [#allocation8], 8192  }
  0x11   :  { %2994 = vsyncadd [#allocation8], 4294959104 }
  0x12   :  { %59 = sfence }
  0x13   :  { %v120_v0 = vld [vmem:[#allocation7 + $0x1c0] sm:$0xff]  ;;  %vm128_vm0 = vcmask 523264   ;;  %v121_v35 = vld [vmem:[#allocation7 + $0x1c8] sm:$0xff]  ;;  %v62_v48 = vld [vmem:[#allocation6 + $0x10] sm:$0xff]  ;;  %s3715_s1 = sld [smem:[#allocation2]]  ;;  %s3004_s4 = smov [#allocation9]  }
  0x14   :  { %v112_v1 = vld [vmem:[#allocation7 + $0x180] sm:$0xff]  ;;  %v3036_v3 = vand.u32 4294901760, %v120_v0  ;;  %v61_v38 = vld [vmem:[#allocation6 + $0x8] sm:$0xff]  ;;  %v3117_v46 = vand.u32 4294901760, %v121_v35  ;;  %v136_v60 = vsel %vm128_vm0, %v62_v48, 0  ;;  %s4088_s2 = sld [smem:[#allocation2 + $0x1]] }
  0x15   :  { %v104_v2 = vld [vmem:[#allocation7 + $0x140] sm:$0xff]  ;;  %v3038_v4 = vand.u32 4294901760, %v112_v1  ;;  %v113_v43 = vld [vmem:[#allocation7 + $0x188] sm:$0xff]  ;;  %v133_v52 = vsel %vm128_vm0, %v61_v38, 0  ;;  %s2890_s29 = sld [smem:[#allocation2 + $0x2]]  ;;  %s2872_s5 = sshll.u32 %s3004_s4, 4  ;;  %s2873_s5 = int_to_ptr.vmem [resolvable:$true] %s2872_s5 }
  0x16   :  { %v3040_v5 = vand.u32 4294901760, %v104_v2  ;;  %v96_v6 = vld [vmem:[#allocation7 + $0x100] sm:$0xff]  ;;  %150 = vmatpush.msra.mxu0 %v3036_v3  ;;  %v3050_v15 = vsub.f32 %v120_v0, %v3036_v3  ;;  %333 = vmatpush.msra.mxu3 %v3036_v3  ;;  %v105_v47 = vld [vmem:[#allocation7 + $0x148] sm:$0xff]  ;;  %v3130_v54 = vsub.f32 %v121_v35, %v3117_v46  ;;  %v3132_v55 = vand.u32 4294901760, %v133_v52  ;;  %s2891_s30 = sld [smem:[#allocation2 + $0x3]]  ;;  %s2874_s8 = sshll.u32 %s4406_s3, 4  ;;  %s2875_s8 = int_to_ptr.hbm [resolvable:$true] %s2874_s8 }
  0x17   :  { %v88_v7 = vld [vmem:[#allocation7 + $0xc0] sm:$0xff]  ;;  %v3042_v9 = vand.u32 4294901760, %v96_v6  ;;  %v3054_v16 = vsub.f32 %v112_v1, %v3038_v4  ;;  %v3134_v56 = vand.u32 4294901760, %v113_v43  ;;  %v3138_v59 = vand.u32 4294901760, %v105_v47  ;;  %v97_v61 = vld [vmem:[#allocation7 + $0x108] sm:$0xff]  ;;  %s3005_s9 = smov 256  }
  0x18   :  { %v80_v8 = vld [vmem:[#allocation7 + $0x80] sm:$0xff]  ;;  %v3044_v10 = vand.u32 4294901760, %v88_v7  ;;  %v3057_v17 = vsub.f32 %v104_v2, %v3040_v5  ;;  %152 = vmatpush.msra.mxu0 %v3038_v4  ;;  %281 = vmatpush.msra.mxu2 %v3050_v15  ;;  %v208_v23 = vand.u32 4294901760, %v3050_v15  ;;  %v538_v63 = vand.u32 4294901760, %v3130_v54  ;;  %v89_v2 = vld [vmem:[#allocation7 + $0xc8] sm:$0xff]  ;;  %s3006_s10 = smov 16  }
  0x19   :  { %v3046_v11 = vand.u32 4294901760, %v80_v8  ;;  %v72_v12 = vld [vmem:[#allocation7 + $0x40] sm:$0xff]  ;;  %v3062_v19 = vsub.f32 %v96_v6, %v3042_v9  ;;  %v214_v24 = vand.u32 4294901760, %v3054_v16  ;;  %335 = vmatpush.msra.mxu3 %v3038_v4  ;;  %v3147_v0 = vsub.f32 %v133_v52, %v3132_v55 }
  0x1a   :  { %v64_v13 = vld [vmem:[#allocation7] sm:$0xff]  ;;  %v3059_v18 = vand.u32 4294901760, %v72_v12  ;;  %v3065_v20 = vsub.f32 %v88_v7, %v3044_v10  ;;  %v220_v25 = vand.u32 4294901760, %v3057_v17  ;;  %154 = vmatpush.msra.mxu0 %v3040_v5  ;;  %284 = vmatpush.msra.mxu2 %v3054_v16  ;;  %v209_v31 = vsub.f32 %v3050_v15, %v208_v23 }
  0x1b   :  { %v60_v14 = vld [vmem:[#allocation6] sm:$0xff]  ;;  %v3067_v21 = vand.u32 4294901760, %v64_v13  ;;  %v3070_v22 = vsub.f32 %v80_v8, %v3046_v11  ;;  %v226_v27 = vand.u32 4294901760, %v3062_v19  ;;  %v215_v32 = vsub.f32 %v3054_v16, %v214_v24  ;;  %337 = vmatpush.msra.mxu3 %v3040_v5 }
  0x1c   :  { %v130_v26 = vsel %vm128_vm0, %v60_v14, 0  ;;  %v232_v29 = vand.u32 4294901760, %v3065_v20  ;;  %v3084_v30 = vsub.f32 %v72_v12, %v3059_v18  ;;  %v221_v33 = vsub.f32 %v3057_v17, %v220_v25  ;;  %156 = vmatpush.msra.mxu0 %v3042_v9  ;;  %287 = vmatpush.msra.mxu2 %v3057_v17 }
  0x1d   :  { %v3080_v28 = vand.u32 4294901760, %v130_v26  ;;  %v238_v34 = vand.u32 4294901760, %v3070_v22  ;;  %v227_v36 = vsub.f32 %v3062_v19, %v226_v27  ;;  %v210_v39 = vand.u32 4294901760, %v209_v31  ;;  %339 = vmatpush.msra.mxu3 %v3042_v9 }
  0x1e   :  { %v216_v40 = vand.u32 4294901760, %v215_v32  ;;  %v233_v41 = vsub.f32 %v3065_v20, %v232_v29  ;;  %v3111_v42 = vsub.f32 %v64_v13, %v3067_v21  ;;  %v222_v44 = vand.u32 4294901760, %v221_v33  ;;  %158 = vmatpush.msra.mxu0 %v3044_v10  ;;  %290 = vmatpush.msra.mxu2 %v3062_v19  ;;  %v63_v32 = vld [vmem:[#allocation6 + $0x18] sm:$0xff] }
  0x1f   :  { %v3103_v37 = vsub.f32 %v130_v26, %v3080_v28  ;;  %211 = vmatpush.msra.mxu1 %v210_v39  ;;  %v228_v49 = vand.u32 4294901760, %v227_v36  ;;  %v239_v50 = vsub.f32 %v3070_v22, %v238_v34  ;;  %v244_v51 = vand.u32 4294901760, %v3084_v30  ;;  %341 = vmatpush.msra.mxu3 %v3044_v10  ;;  %v81_v39 = vld [vmem:[#allocation7 + $0x88] sm:$0xff] }
  0x20   :  { %160 = vmatpush.msra.mxu0 %v3046_v11  ;;  %v234_v57 = vand.u32 4294901760, %v233_v41  ;;  %v250_v58 = vand.u32 4294901760, %v3111_v42  ;;  %293 = vmatpush.msra.mxu2 %v3065_v20  ;;  %v3150_v1 = vsub.f32 %v113_v43, %v3134_v56  ;;  %v3157_v8 = vsub.f32 %v105_v47, %v3138_v59 }
  0x21   :  { %v3115_v45 = vand.u32 4294901760, %v3103_v37  ;;  %217 = vmatpush.msra.mxu1 %v216_v40  ;;  %343 = vmatpush.msra.mxu3 %v3046_v11  ;;  %v240_v6 = vand.u32 4294901760, %v239_v50  ;;  %v245_v7 = vsub.f32 %v3084_v30, %v244_v51  ;;  %v3159_v12 = vand.u32 4294901760, %v136_v60  ;;  %v73_v50 = vld [vmem:[#allocation7 + $0x48] sm:$0xff] }
  0x22   :  { %162 = vmatpush.msra.mxu0 %v3059_v18  ;;  %296 = vmatpush.msra.mxu2 %v3070_v22  ;;  %v539_v13 = vsub.f32 %v3130_v54, %v538_v63  ;;  %v3167_v14 = vand.u32 4294901760, %v3147_v0  ;;  %v544_v26 = vand.u32 4294901760, %v3150_v1  ;;  %v3170_v31 = vand.u32 4294901760, %v97_v61 }
  0x23   :  { %v168_v53 = vsub.f32 %v3103_v37, %v3115_v45  ;;  %223 = vmatpush.msra.mxu1 %v222_v44  ;;  %345 = vmatpush.msra.mxu3 %v3059_v18  ;;  %v251_v33 = vsub.f32 %v3111_v42, %v250_v58  ;;  %v4407_v35 = vand.u32 4294901760, %v3157_v8  ;;  %v3178_v36 = vsub.f32 %v136_v60, %v3159_v12  ;;  %v65_v60 = vld [vmem:[#allocation7 + $0x8] sm:$0xff] }
  0x24   :  { %164 = vmatpush.msra.mxu0 %v3067_v21  ;;  %v3180_v38 = vand.u32 4294901760, %v89_v2  ;;  %299 = vmatpush.msra.mxu2 %v3084_v30  ;;  %v176_v40 = vsub.f32 %v3147_v0, %v3167_v14  ;;  %v545_v41 = vsub.f32 %v3150_v1, %v544_v26  ;;  %v3190_v43 = vsub.f32 %v97_v61, %v3170_v31  ;;  %v114_v30 = vld [vmem:[#allocation7 + $0x190] sm:$0xff] }
  0x25   :  { %v3143_v62 = vand.u32 4294901760, %v168_v53  ;;  %229 = vmatpush.msra.mxu1 %v228_v49  ;;  %347 = vmatpush.msra.mxu3 %v3067_v21  ;;  %v246_v44 = vand.u32 4294901760, %v245_v7  ;;  %v540_v47 = vand.u32 4294901760, %v539_v13  ;;  %v139_v49 = vsel %vm128_vm0, %v63_v32, 0 }
  0x26   :  { %v3194_v48 = vsub.f32 %v89_v2, %v3180_v38  ;;  %302 = vmatpush.msra.mxu2 %v3111_v42  ;;  %351 = vmatmul.f32.vlgmr.msra.gmra.mxu3 %v3115_v45  ;;  %v556_v52 = vand.u32 4294901760, %v3190_v43  ;;  %v3200_v53 = vand.u32 4294901760, %v81_v39  ;;  %v546_v61 = vand.u32 4294901760, %v545_v41 }
  0x27   :  { %170 = vmatmul.f32.vlgmr.msra.gmra.mxu0 %v3143_v62  ;;  %235 = vmatpush.msra.mxu1 %v234_v57  ;;  %v252_v57 = vand.u32 4294901760, %v251_v33  ;;  %v551_v2 = vsub.f32 %v3157_v8, %v4407_v35  ;;  %v3207_v7 = vand.u32 4294901760, %v3178_v36  ;;  %v3212_v13 = vand.u32 4294901760, %v176_v40 }
  0x28   :  { %305 = vmatmul.f32.vlgmr.msra.gmra.mxu2 %v3103_v37  ;;  %384 = vmatpush.msrb.mxu0 %v208_v23  ;;  %v3214_v32 = vand.u32 4294901760, %v139_v49  ;;  %v3219_v33 = vand.u32 4294901760, %v73_v50  ;;  %v562_v41 = vand.u32 4294901760, %v3194_v48  ;;  %v3222_v35 = vand.u32 4294901760, %v65_v60 }
  0x29   :  { %241 = vmatpush.msra.mxu1 %v240_v6  ;;  %480 = vmatpush.msrb.mxu2 %v3117_v46  ;;  %v3217_v6 = vsub.f32 %v81_v39, %v3200_v53  ;;  %v557_v15 = vsub.f32 %v3190_v43, %v556_v52  ;;  %v552_v39 = vand.u32 4294901760, %v551_v2  ;;  %v184_v40 = vsub.f32 %v3178_v36, %v3207_v7 }
  0x2a   :  { %541 = vmatpush.msrb.mxu3 %v540_v47  ;;  %388 = vmatpush.msrb.mxu0 %v214_v24  ;;  %v3231_v23 = vsub.f32 %v73_v50, %v3219_v33  ;;  %v3238_v16 = vsub.f32 %v139_v49, %v3214_v32  ;;  %v3247_v47 = vsub.f32 %v65_v60, %v3222_v35 }
  0x2b   :  { %247 = vmatpush.msra.mxu1 %v246_v44  ;;  %482 = vmatpush.msrb.mxu2 %v3134_v56  ;;  %v568_v24 = vand.u32 4294901760, %v3217_v6  ;;  %v563_v44 = vsub.f32 %v3194_v48, %v562_v41  ;;  %v558_v49 = vand.u32 4294901760, %v557_v15 }
  0x2c   :  { %547 = vmatpush.msrb.mxu3 %v546_v61  ;;  %392 = vmatpush.msrb.mxu0 %v220_v25  ;;  %v574_v50 = vand.u32 4294901760, %v3231_v23  ;;  %v3259_v60 = vand.u32 4294901760, %v3238_v16 }
  0x2d   :  { %253 = vmatpush.msra.mxu1 %v252_v57  ;;  %484 = vmatpush.msrb.mxu2 %v3138_v59  ;;  %v569_v17 = vsub.f32 %v3217_v6, %v568_v24  ;;  %v564_v25 = vand.u32 4294901760, %v563_v44  ;;  %v66_v44 = vld [vmem:[#allocation7 + $0x10] sm:$0xff] }
  0x2e   :  { %255 = vmatmul.f32.vlgmr.msra.gmra.mxu1 %v3080_v28  ;;  %357 = vmatmul.f32.gmra.mxu3 %v3167_v14  ;;  %v575_v57 = vsub.f32 %v3231_v23, %v574_v50 }
  0x2f   :  { %178 = vmatmul.f32.gmra.mxu0 %v3212_v13  ;;  %439 = vmatpush.msrb.mxu1 %v3036_v3  ;;  %v3255_v3 = vand.u32 4294901760, %v184_v40  ;;  %v570_v19 = vand.u32 4294901760, %v569_v17 }
  0x30   :  { %310 = vmatmul.f32.gmra.mxu2 %v3147_v0  ;;  %553 = vmatpush.msrb.mxu3 %v552_v39  ;;  %v74_v39 = vld [vmem:[#allocation7 + $0x50] sm:$0xff] }
  0x31   :  { %441 = vmatpush.msrb.mxu1 %v3038_v4  ;;  %486 = vmatpush.msrb.mxu2 %v3170_v31  ;;  %v580_v4 = vand.u32 4294901760, %v3247_v47 }
  0x32   :  { %396 = vmatpush.msrb.mxu0 %v226_v27  ;;  %559 = vmatpush.msrb.mxu3 %v558_v49  ;;  %v3427_v49 = vand.u32 4294901760, %v66_v44 }
  0x33   :  { %443 = vmatpush.msrb.mxu1 %v3040_v5  ;;  %488 = vmatpush.msrb.mxu2 %v3180_v38  ;;  %v192_v5 = vsub.f32 %v3238_v16, %v3259_v60  ;;  %v581_v27 = vsub.f32 %v3247_v47, %v580_v4 }
  0x34   :  { %400 = vmatpush.msrb.mxu0 %v232_v29  ;;  %565 = vmatpush.msrb.mxu3 %v564_v25 }
  0x35   :  { %445 = vmatpush.msrb.mxu1 %v3042_v9  ;;  %490 = vmatpush.msrb.mxu2 %v3200_v53  ;;  %v576_v9 = vand.u32 4294901760, %v575_v57  ;;  %v3288_v20 = vand.u32 4294901760, %v192_v5  ;;  %v3442_v57 = vsub.f32 %v66_v44, %v3427_v49 }
  0x36   :  { %259 = vmatmul.f32.gmra.mxu1 %v3132_v55  ;;  %363 = vmatmul.f32.gmra.mxu3 %v3207_v7 }
  0x37   :  { %186 = vmatmul.f32.gmra.mxu0 %v3255_v3  ;;  %447 = vmatpush.msrb.mxu1 %v3044_v10  ;;  %v582_v10 = vand.u32 4294901760, %v581_v27  ;;  %v910_v27 = vand.u32 4294901760, %v3442_v57 }
  0x38   :  { %315 = vmatmul.f32.gmra.mxu2 %v3178_v36  ;;  %404 = vmatpush.msrb.mxu0 %v238_v34  ;;  %v3345_v34 = vand.u32 4294901760, %v114_v30 }
  0x39   :  { %571 = vmatpush.msrb.mxu3 %v570_v19  ;;  %449 = vmatpush.msrb.mxu1 %v3046_v11  ;;  %v4410_v11 = vand.u32 4294901760, %v3157_v8 }
  0x3a   :  { %492 = vmatpush.msrb.mxu2 %v3219_v33  ;;  %408 = vmatpush.msrb.mxu0 %v244_v51  ;;  %v106_v51 = vld [vmem:[#allocation7 + $0x150] sm:$0xff] }
  0x3b   :  { %577 = vmatpush.msrb.mxu3 %v576_v9  ;;  %451 = vmatpush.msrb.mxu1 %v3059_v18  ;;  %v122_v18 = vld [vmem:[#allocation7 + $0x1d0] sm:$0xff] }
  0x3c   :  { %412 = vmatpush.msrb.mxu0 %v250_v58  ;;  %494 = vmatpush.msrb.mxu2 %v3222_v35 }
  0x3d   :  { %583 = vmatpush.msrb.mxu3 %v582_v10  ;;  %453 = vmatpush.msrb.mxu1 %v3067_v21  ;;  %v3327_v21 = vand.u32 4294901760, %v122_v18  ;;  %v911_v10 = vsub.f32 %v3442_v57, %v910_v27 }
  0x3e   :  { %263 = vmatmul.f32.gmra.mxu1 %v3159_v12  ;;  %369 = vmatmul.f32.gmra.mxu3 %v3259_v60 }
  0x3f   :  { %194 = vmatmul.f32.gmra.mxu0 %v3288_v20  ;;  %714 = vmatpush.msra.mxu2 %v538_v63  ;;  %v3335_v22 = vsub.f32 %v122_v18, %v3327_v21 }
  0x40   :  { %320 = vmatmul.f32.gmra.mxu2 %v3238_v16  ;;  %611 = vmatpush.msra.mxu0 %v3130_v54  ;;  %v3360_v54 = vand.u32 4294901760, %v106_v51 }
  0x41   :  { %769 = vmatpush.msra.mxu3 %v3117_v46  ;;  %663 = vmatpush.msra.mxu1 %v3117_v46  ;;  %v868_v29 = vand.u32 4294901760, %v3335_v22  ;;  %v3356_v46 = vsub.f32 %v114_v30, %v3345_v34  ;;  %v912_v30 = vand.u32 4294901760, %v911_v10 }
  0x42   :  { %718 = vmatpush.msra.mxu2 %v544_v26  ;;  %614 = vmatpush.msra.mxu0 %v3150_v1 }
  0x43   :  { %771 = vmatpush.msra.mxu3 %v3134_v56  ;;  %665 = vmatpush.msra.mxu1 %v3134_v56  ;;  %v869_v42 = vsub.f32 %v3335_v22, %v868_v29  ;;  %v874_v58 = vand.u32 4294901760, %v3356_v46 }
  0x44   :  { %722 = vmatpush.msra.mxu2 %v4410_v11  ;;  %617 = vmatpush.msra.mxu0 %v3157_v8  ;;  %v98_v8 = vld [vmem:[#allocation7 + $0x110] sm:$0xff]  ;;  %v123_v11 = vld [vmem:[#allocation7 + $0x1d8] sm:$0xff] }
  0x45   :  { %773 = vmatpush.msra.mxu3 %v3138_v59  ;;  %667 = vmatpush.msra.mxu1 %v3138_v59  ;;  %v870_v56 = vand.u32 4294901760, %v869_v42  ;;  %v3369_v59 = vsub.f32 %v106_v51, %v3360_v54  ;;  %v875_v63 = vsub.f32 %v3356_v46, %v874_v58  ;;  %v3459_v18 = vand.u32 4294901760, %v123_v11 }
  0x46   :  { %267 = vmatmul.f32.gmra.mxu1 %v3214_v32  ;;  %585 = vmatmul.f32.vlgmr.msrb.gmra.mxu3 %v3080_v28 }
  0x47   :  { %414 = vmatmul.f32.vlgmr.msrb.gmra.mxu0 %v3080_v28  ;;  %726 = vmatpush.msra.mxu2 %v556_v52  ;;  %v880_v1 = vand.u32 4294901760, %v3369_v59  ;;  %v876_v26 = vand.u32 4294901760, %v875_v63  ;;  %v3465_v42 = vsub.f32 %v123_v11, %v3459_v18 }
  0x48   :  { %500 = vmatmul.f32.vlgmr.msrb.gmra.mxu2 %v3143_v62  ;;  %620 = vmatpush.msra.mxu0 %v3190_v43  ;;  %v90_v43 = vld [vmem:[#allocation7 + $0xd0] sm:$0xff] }
  0x49   :  { %775 = vmatpush.msra.mxu3 %v3170_v31  ;;  %669 = vmatpush.msra.mxu1 %v3170_v31  ;;  %v3380_v31 = vand.u32 4294901760, %v98_v8  ;;  %v3393_v52 = vand.u32 4294901760, %v90_v43  ;;  %v1198_v51 = vand.u32 4294901760, %v3465_v42 }
  0x4a   :  { %730 = vmatpush.msra.mxu2 %v562_v41  ;;  %623 = vmatpush.msra.mxu0 %v3194_v48 }
  0x4b   :  { %777 = vmatpush.msra.mxu3 %v3180_v38  ;;  %671 = vmatpush.msra.mxu1 %v3180_v38  ;;  %v3390_v38 = vsub.f32 %v98_v8, %v3380_v31  ;;  %v3400_v61 = vsub.f32 %v90_v43, %v3393_v52  ;;  %v99_v8 = vld [vmem:[#allocation7 + $0x118] sm:$0xff] }
  0x4c   :  { %734 = vmatpush.msra.mxu2 %v568_v24  ;;  %626 = vmatpush.msra.mxu0 %v3217_v6  ;;  %v3423_v24 = vand.u32 4294901760, %v74_v39 }
  0x4d   :  { %779 = vmatpush.msra.mxu3 %v3200_v53  ;;  %673 = vmatpush.msra.mxu1 %v3200_v53  ;;  %v886_v53 = vand.u32 4294901760, %v3390_v38  ;;  %v892_v6 = vand.u32 4294901760, %v3400_v61 }
  0x4e   :  { %455 = vmatmul.f32.vlgmr.msrb.gmra.mxu1 %v3080_v28  ;;  %589 = vmatmul.f32.gmra.mxu3 %v3132_v55  ;;  %v3432_v17 = vsub.f32 %v74_v39, %v3423_v24 }
  0x4f   :  { %418 = vmatmul.f32.gmra.mxu0 %v3132_v55  ;;  %738 = vmatpush.msra.mxu2 %v574_v50  ;;  %v887_v2 = vsub.f32 %v3390_v38, %v886_v53 }
  0x50   :  { %508 = vmatmul.f32.gmra.mxu2 %v3212_v13  ;;  %629 = vmatpush.msra.mxu0 %v3231_v23  ;;  %v893_v23 = vsub.f32 %v3400_v61, %v892_v6 }
  0x51   :  { %781 = vmatpush.msra.mxu3 %v3219_v33  ;;  %675 = vmatpush.msra.mxu1 %v3219_v33  ;;  %v82_v33 = vld [vmem:[#allocation7 + $0x90] sm:$0xff]  ;;  %v888_v41 = vand.u32 4294901760, %v887_v2 }
  0x52   :  { %632 = vmatpush.msra.mxu0 %v3247_v47  ;;  %742 = vmatpush.msra.mxu2 %v580_v4  ;;  %v3412_v15 = vand.u32 4294901760, %v82_v33  ;;  %v894_v47 = vand.u32 4294901760, %v893_v23  ;;  %v904_v4 = vand.u32 4294901760, %v3432_v17 }
  0x53   :  { %783 = vmatpush.msra.mxu3 %v3222_v35  ;;  %677 = vmatpush.msra.mxu1 %v3222_v35  ;;  %v881_v35 = vsub.f32 %v3369_v59, %v880_v1 }
  0x54   :  { %941 = vmatpush.msrb.mxu2 %v3335_v22  ;;  %810 = vmatpush.msrb.mxu0 %v3327_v21  ;;  %v3421_v40 = vsub.f32 %v82_v33, %v3412_v15  ;;  %v905_v19 = vsub.f32 %v3432_v17, %v904_v4  ;;  %v75_v33 = vld [vmem:[#allocation7 + $0x58] sm:$0xff] }
  0x55   :  { %993 = vmatpush.msrb.mxu3 %v3327_v21  ;;  %871 = vmatpush.msrb.mxu1 %v870_v56  ;;  %v882_v48 = vand.u32 4294901760, %v881_v35  ;;  %v115_v56 = vld [vmem:[#allocation7 + $0x198] sm:$0xff]  ;;  %v3506_v35 = vand.u32 4294901760, %v99_v8  ;;  %v3537_v39 = vand.u32 4294901760, %v75_v33 }
  0x56   :  { %459 = vmatmul.f32.gmra.mxu1 %v3132_v55  ;;  %593 = vmatmul.f32.gmra.mxu3 %v3159_v12  ;;  %v898_v50 = vand.u32 4294901760, %v3421_v40  ;;  %v906_v9 = vand.u32 4294901760, %v905_v19  ;;  %v3473_v22 = vand.u32 4294901760, %v115_v56 }
  0x57   :  { %422 = vmatmul.f32.gmra.mxu0 %v3159_v12  ;;  %944 = vmatpush.msrb.mxu2 %v3356_v46  ;;  %v3517_v43 = vsub.f32 %v99_v8, %v3506_v35 }
  0x58   :  { %516 = vmatmul.f32.gmra.mxu2 %v3255_v3  ;;  %812 = vmatpush.msrb.mxu0 %v3345_v34  ;;  %v899_v25 = vsub.f32 %v3421_v40, %v898_v50  ;;  %v3483_v46 = vsub.f32 %v115_v56, %v3473_v22 }
  0x59   :  { %995 = vmatpush.msrb.mxu3 %v3345_v34  ;;  %877 = vmatpush.msrb.mxu1 %v876_v26 }
  0x5a   :  { %947 = vmatpush.msrb.mxu2 %v3369_v59  ;;  %814 = vmatpush.msrb.mxu0 %v3360_v54  ;;  %v900_v5 = vand.u32 4294901760, %v899_v25  ;;  %v1204_v59 = vand.u32 4294901760, %v3483_v46 }
  0x5b   :  { %997 = vmatpush.msrb.mxu3 %v3360_v54  ;;  %883 = vmatpush.msrb.mxu1 %v882_v48 }
  0x5c   :  { %950 = vmatpush.msrb.mxu2 %v3390_v38  ;;  %816 = vmatpush.msrb.mxu0 %v3380_v31  ;;  %v91_v38 = vld [vmem:[#allocation7 + $0xd8] sm:$0xff] }
  0x5d   :  { %999 = vmatpush.msrb.mxu3 %v3380_v31  ;;  %889 = vmatpush.msrb.mxu1 %v888_v41  ;;  %v3519_v48 = vand.u32 4294901760, %v91_v38 }
  0x5e   :  { %463 = vmatmul.f32.gmra.mxu1 %v3159_v12  ;;  %953 = vmatpush.msrb.mxu2 %v3400_v61  ;;  %v1216_v61 = vand.u32 4294901760, %v3517_v43 }
  0x5f   :  { %426 = vmatmul.f32.gmra.mxu0 %v3214_v32  ;;  %597 = vmatmul.f32.gmra.mxu3 %v3214_v32  ;;  %v3525_v2 = vsub.f32 %v91_v38, %v3519_v48 }
  0x60   :  { %818 = vmatpush.msrb.mxu0 %v3393_v52  ;;  %524 = vmatmul.f32.gmra.mxu2 %v3288_v20  ;;  %v1217_v41 = vsub.f32 %v3517_v43, %v1216_v61 }
  0x61   :  { %1001 = vmatpush.msrb.mxu3 %v3393_v52  ;;  %956 = vmatpush.msrb.mxu2 %v3421_v40  ;;  %v1222_v23 = vand.u32 4294901760, %v3525_v2  ;;  %v67_v40 = vld [vmem:[#allocation7 + $0x18] sm:$0xff] }
  0x62   :  { %820 = vmatpush.msrb.mxu0 %v3412_v15  ;;  %895 = vmatpush.msrb.mxu1 %v894_v47  ;;  %v1218_v44 = vand.u32 4294901760, %v1217_v41  ;;  %v3550_v25 = vand.u32 4294901760, %v67_v40 }
  0x63   :  { %1003 = vmatpush.msrb.mxu3 %v3412_v15  ;;  %959 = vmatpush.msrb.mxu2 %v3432_v17  ;;  %v1223_v47 = vsub.f32 %v3525_v2, %v1222_v23  ;;  %v1233_v17 = vsub.f32 %v75_v33, %v3537_v39  ;;  %v92_v33 = vld [vmem:[#allocation7 + $0xe0] sm:$0xff] }
  0x64   :  { %822 = vmatpush.msrb.mxu0 %v3423_v24  ;;  %901 = vmatpush.msrb.mxu1 %v900_v5  ;;  %v1239_v5 = vsub.f32 %v67_v40, %v3550_v25 }
  0x65   :  { %1005 = vmatpush.msrb.mxu3 %v3423_v24  ;;  %962 = vmatpush.msrb.mxu2 %v3442_v57  ;;  %v1234_v57 = vand.u32 4294901760, %v1233_v17 }
  0x66   :  { %467 = vmatmul.f32.gmra.mxu1 %v3214_v32  ;;  %824 = vmatpush.msrb.mxu0 %v3427_v49 }
  0x67   :  { %635 = vmatmul.f32.vlgmr.msra.gmra.mxu0 %v3103_v37  ;;  %785 = vmatmul.f32.vlgmr.msra.gmra.mxu3 %v3080_v28 }
  0x68   :  { %744 = vmatmul.f32.vlgmr.msra.gmra.mxu2 %v3080_v28  ;;  %1007 = vmatpush.msrb.mxu3 %v3427_v49 }
  0x69   :  { %1044 = vmatpush.msra.mxu0 %v868_v29  ;;  %907 = vmatpush.msrb.mxu1 %v906_v9  ;;  %v1199_v29 = vsub.f32 %v3465_v42, %v1198_v51 }
  0x6a   :  { %1140 = vmatpush.msra.mxu2 %v3459_v18 }
  0x6b   :  { %1048 = vmatpush.msra.mxu0 %v874_v58  ;;  %913 = vmatpush.msrb.mxu1 %v912_v30  ;;  %v107_v58 = vld [vmem:[#allocation7 + $0x158] sm:$0xff]  ;;  %v124_v30 = vld [vmem:[#allocation7 + $0x1e0] sm:$0xff] }
  0x6c   :  { %1142 = vmatpush.msra.mxu2 %v3473_v22  ;;  %v3487_v63 = vand.u32 4294901760, %v107_v58 }
  0x6d   :  { %1052 = vmatpush.msra.mxu0 %v880_v1 }
  0x6e   :  { %681 = vmatmul.f32.vlgmr.msra.gmra.mxu1 %v3115_v45  ;;  %1144 = vmatpush.msra.mxu2 %v3487_v63  ;;  %v3495_v1 = vsub.f32 %v107_v58, %v3487_v63 }
  0x6f   :  { %640 = vmatmul.f32.gmra.mxu0 %v3147_v0  ;;  %1099 = vmatpush.msra.mxu1 %v3327_v21  ;;  %v1200_v21 = vand.u32 4294901760, %v1199_v29 }
  0x70   :  { %789 = vmatmul.f32.gmra.mxu3 %v3132_v55  ;;  %748 = vmatmul.f32.gmra.mxu2 %v3132_v55 }
  0x71   :  { %1101 = vmatpush.msra.mxu1 %v3345_v34  ;;  %1056 = vmatpush.msra.mxu0 %v886_v53  ;;  %v1205_v34 = vsub.f32 %v3483_v46, %v1204_v59 }
  0x72   :  { %1201 = vmatpush.msra.mxu3 %v1200_v21  ;;  %1146 = vmatpush.msra.mxu2 %v3506_v35  ;;  %v116_v21 = vld [vmem:[#allocation7 + $0x1a0] sm:$0xff] }
  0x73   :  { %1103 = vmatpush.msra.mxu1 %v3360_v54  ;;  %1060 = vmatpush.msra.mxu0 %v892_v6  ;;  %v1210_v54 = vand.u32 4294901760, %v3495_v1  ;;  %v1206_v26 = vand.u32 4294901760, %v1205_v34 }
  0x74   :  { %1148 = vmatpush.msra.mxu2 %v3519_v48 }
  0x75   :  { %1105 = vmatpush.msra.mxu1 %v3380_v31  ;;  %1064 = vmatpush.msra.mxu0 %v898_v50  ;;  %v1211_v31 = vsub.f32 %v3495_v1, %v1210_v54 }
  0x76   :  { %687 = vmatmul.f32.gmra.mxu1 %v3167_v14  ;;  %1207 = vmatpush.msra.mxu3 %v1206_v26 }
  0x77   :  { %645 = vmatmul.f32.gmra.mxu0 %v3178_v36  ;;  %1107 = vmatpush.msra.mxu1 %v3393_v52  ;;  %v1212_v53 = vand.u32 4294901760, %v1211_v31  ;;  %v83_v52 = vld [vmem:[#allocation7 + $0x98] sm:$0xff] }
  0x78   :  { %793 = vmatmul.f32.gmra.mxu3 %v3159_v12  ;;  %752 = vmatmul.f32.gmra.mxu2 %v3159_v12  ;;  %v3527_v6 = vand.u32 4294901760, %v83_v52 }
  0x79   :  { %1109 = vmatpush.msra.mxu1 %v3412_v15  ;;  %1068 = vmatpush.msra.mxu0 %v904_v4 }
  0x7a   :  { %1213 = vmatpush.msra.mxu3 %v1212_v53  ;;  %v3535_v15 = vsub.f32 %v83_v52, %v3527_v6  ;;  %1150 = vmatpush.msra.mxu2 %v3527_v6 }
  0x7b   :  { %1072 = vmatpush.msra.mxu0 %v910_v27  ;;  %1111 = vmatpush.msra.mxu1 %v3423_v24  ;;  %v1224_v24 = vand.u32 4294901760, %v1223_v47  ;;  %v1235_v27 = vsub.f32 %v1233_v17, %v1234_v57 }
  0x7c   :  { %v1228_v50 = vand.u32 4294901760, %v3535_v15  ;;  %1219 = vmatpush.msra.mxu3 %v1218_v44  ;;  %1152 = vmatpush.msra.mxu2 %v3537_v39 }
  0x7d   :  { %1113 = vmatpush.msra.mxu1 %v3427_v49  ;;  %v1240_v49 = vand.u32 4294901760, %v1239_v5  ;;  %v1236_v9 = vand.u32 4294901760, %v1235_v27  ;;  %v76_v27 = vld [vmem:[#allocation7 + $0x60] sm:$0xff] }
  0x7e   :  { %693 = vmatmul.f32.gmra.mxu1 %v3207_v7  ;;  %v1229_v4 = vsub.f32 %v3535_v15, %v1228_v50  ;;  %1225 = vmatpush.msra.mxu3 %v1224_v24  ;;  %v84_v24 = vld [vmem:[#allocation7 + $0xa0] sm:$0xff] }
  0x7f   :  { %650 = vmatmul.f32.gmra.mxu0 %v3238_v16  ;;  %1154 = vmatpush.msra.mxu2 %v3550_v25  ;;  %v1241_v10 = vsub.f32 %v1239_v5, %v1240_v49 }
  0x80   :  { %797 = vmatmul.f32.gmra.mxu3 %v3214_v32  ;;  %756 = vmatmul.f32.gmra.mxu2 %v3214_v32  ;;  %v1230_v19 = vand.u32 4294901760, %v1229_v4 }
  0x81   :  { %v1242_v11 = vand.u32 4294901760, %v1241_v10  ;;  %v3707_v10 = vand.u32 4294901760, %v76_v27 }
  0x82   :  { %1231 = vmatpush.msra.mxu3 %v1230_v19 }
  0x84   :  { %1237 = vmatpush.msra.mxu3 %v1236_v9 }
  0x86   :  { %699 = vmatmul.f32.gmra.mxu1 %v3259_v60  ;;  %1243 = vmatpush.msra.mxu3 %v1242_v11 }
  0x87   :  { %830 = vmatmul.f32.vlgmr.msrb.gmra.mxu0 %v3143_v62 }
  0x88   :  { %1271 = vmatpush.msrb.mxu0 %v3465_v42  ;;  %1011 = vmatmul.f32.vlgmr.msrb.gmra.mxu3 %v3115_v45  ;;  %v3607_v42 = vand.u32 4294901760, %v124_v30 }
  0x89   :  { %965 = vmatmul.f32.vlgmr.msrb.gmra.mxu2 %v3103_v37  ;;  %1429 = vmatpush.msrb.mxu3 %v3459_v18 }
  0x8a   :  { %1274 = vmatpush.msrb.mxu0 %v3483_v46  ;;  %1374 = vmatpush.msrb.mxu2 %v1198_v51  ;;  %v3618_v46 = vsub.f32 %v124_v30, %v3607_v42 }
  0x8b   :  { %1431 = vmatpush.msrb.mxu3 %v3473_v22 }
  0x8c   :  { %1277 = vmatpush.msrb.mxu0 %v3495_v1  ;;  %1378 = vmatpush.msrb.mxu2 %v1204_v59  ;;  %v1528_v58 = vand.u32 4294901760, %v3618_v46  ;;  %v108_v59 = vld [vmem:[#allocation7 + $0x160] sm:$0xff] }
  0x8d   :  { %1433 = vmatpush.msrb.mxu3 %v3487_v63  ;;  %v3633_v34 = vand.u32 4294901760, %v108_v59 }
  0x8e   :  { %1280 = vmatpush.msrb.mxu0 %v3517_v43  ;;  %915 = vmatmul.f32.vlgmr.msrb.gmra.mxu1 %v3080_v28  ;;  %v1529_v1 = vsub.f32 %v3618_v46, %v1528_v58 }
  0x8f   :  { %838 = vmatmul.f32.gmra.mxu0 %v3212_v13  ;;  %1323 = vmatpush.msrb.mxu1 %v3459_v18  ;;  %v3649_v43 = vsub.f32 %v108_v59, %v3633_v34  ;;  %v3720_v59 = vsub.f32 %v76_v27, %v3707_v10 }
  0x90   :  { %1382 = vmatpush.msrb.mxu2 %v1210_v54  ;;  %1017 = vmatmul.f32.gmra.mxu3 %v3167_v14  ;;  %v1530_v38 = vand.u32 4294901760, %v1529_v1 }
  0x91   :  { %1283 = vmatpush.msrb.mxu0 %v3525_v2  ;;  %970 = vmatmul.f32.gmra.mxu2 %v3147_v0  ;;  %v1540_v52 = vand.u32 4294901760, %v3649_v43 }
  0x92   :  { %1325 = vmatpush.msrb.mxu1 %v3473_v22  ;;  %1386 = vmatpush.msrb.mxu2 %v1216_v61  ;;  %v100_v61 = vld [vmem:[#allocation7 + $0x120] sm:$0xff] }
  0x93   :  { %1286 = vmatpush.msrb.mxu0 %v3535_v15  ;;  %1435 = vmatpush.msrb.mxu3 %v3506_v35  ;;  %v1541_v41 = vsub.f32 %v3649_v43, %v1540_v52 }
  0x94   :  { %1327 = vmatpush.msrb.mxu1 %v3487_v63  ;;  %1390 = vmatpush.msrb.mxu2 %v1222_v23  ;;  %v3628_v63 = vand.u32 4294901760, %v116_v21  ;;  %v3669_v23 = vand.u32 4294901760, %v92_v33 }
  0x95   :  { %1289 = vmatpush.msrb.mxu0 %v1233_v17  ;;  %1437 = vmatpush.msrb.mxu3 %v3519_v48 }
  0x96   :  { %1329 = vmatpush.msrb.mxu1 %v3506_v35  ;;  %1394 = vmatpush.msrb.mxu2 %v1228_v50  ;;  %v3640_v26 = vsub.f32 %v116_v21, %v3628_v63  ;;  %v1542_v50 = vand.u32 4294901760, %v1541_v41  ;;  %v3685_v17 = vsub.f32 %v92_v33, %v3669_v23  ;;  %v1564_v41 = vand.u32 4294901760, %v3720_v59 }
  0x97   :  { %846 = vmatmul.f32.gmra.mxu0 %v3255_v3  ;;  %919 = vmatmul.f32.gmra.mxu1 %v3132_v55 }
  0x98   :  { %1331 = vmatpush.msrb.mxu1 %v3519_v48  ;;  %1023 = vmatmul.f32.gmra.mxu3 %v3207_v7  ;;  %v1534_v48 = vand.u32 4294901760, %v3640_v26  ;;  %v1552_v19 = vand.u32 4294901760, %v3685_v17 }
  0x99   :  { %975 = vmatmul.f32.gmra.mxu2 %v3178_v36  ;;  %1439 = vmatpush.msrb.mxu3 %v3527_v6 }
  0x9a   :  { %1333 = vmatpush.msrb.mxu1 %v3527_v6  ;;  %1398 = vmatpush.msrb.mxu2 %v1234_v57  ;;  %v1535_v53 = vsub.f32 %v3640_v26, %v1534_v48  ;;  %v3664_v6 = vand.u32 4294901760, %v100_v61  ;;  %v3696_v57 = vand.u32 4294901760, %v84_v24  ;;  %v1553_v11 = vsub.f32 %v3685_v17, %v1552_v19 }
  0x9b   :  { %1441 = vmatpush.msrb.mxu3 %v3537_v39  ;;  %1292 = vmatpush.msrb.mxu0 %v1239_v5 }
  0x9c   :  { %1335 = vmatpush.msrb.mxu1 %v3537_v39  ;;  %1402 = vmatpush.msrb.mxu2 %v1240_v49  ;;  %v1536_v2 = vand.u32 4294901760, %v1535_v53  ;;  %v3676_v40 = vsub.f32 %v100_v61, %v3664_v6  ;;  %v3705_v9 = vsub.f32 %v84_v24, %v3696_v57  ;;  %v1565_v24 = vsub.f32 %v3720_v59, %v1564_v41 }
  0x9d   :  { %1443 = vmatpush.msrb.mxu3 %v3550_v25 }
  0x9e   :  { %1337 = vmatpush.msrb.mxu1 %v3550_v25  ;;  %v1546_v25 = vand.u32 4294901760, %v3676_v40  ;;  %v1558_v21 = vand.u32 4294901760, %v3705_v9 }
  0x9f   :  { %854 = vmatmul.f32.gmra.mxu0 %v3288_v20  ;;  %923 = vmatmul.f32.gmra.mxu1 %v3159_v12 }
  0xa0   :  { %1029 = vmatmul.f32.gmra.mxu3 %v3259_v60  ;;  %v1547_v4 = vsub.f32 %v3676_v40, %v1546_v25  ;;  %v1559_v33 = vsub.f32 %v3705_v9, %v1558_v21 }
  0xa1   :  { %980 = vmatmul.f32.gmra.mxu2 %v3238_v16 }
  0xa2   :  { %v1548_v49 = vand.u32 4294901760, %v1547_v4 }
  0xa4   :  { %v3601_v18 = vpop.f32.mrf.mxu0 }
  0xa7   :  { %927 = vmatmul.f32.gmra.mxu1 %v3214_v32  ;;  %1074 = vmatmul.f32.vlgmr.msra.gmra.mxu0 %v3080_v28 }
  0xa8   :  { %1245 = vmatmul.f32.vlgmr.msra.gmra.mxu3 %v3080_v28  ;;  %1470 = vmatpush.msra.mxu0 %v3607_v42 }
  0xa9   :  { %1160 = vmatmul.f32.vlgmr.msra.gmra.mxu2 %v3143_v62  ;;  %v3615_v29 = vpop.f32.mrf.mxu3  ;;  %1653 = vmatpush.msra.mxu3 %v3607_v42 }
  0xaa   :  { %1601 = vmatpush.msra.mxu2 %v3618_v46  ;;  %1472 = vmatpush.msra.mxu0 %v3628_v63 }
  0xab   :  { %v3611_v56 = vpop.f32.mrf.mxu1  ;;  %v3613_v22 = vpop.f32.mrf.mxu2  ;;  %1655 = vmatpush.msra.mxu3 %v3628_v63 }
  0xac   :  { %v3609_v51 = vpop.f32.mrf.mxu0  ;;  %1604 = vmatpush.msra.mxu2 %v3640_v26  ;;  %1474 = vmatpush.msra.mxu0 %v3633_v34  ;;  %v257_v5 = vadd.f32 %v3611_v56, %v3601_v18  ;;  %v68_v18 = vld [vmem:[#allocation7 + $0x20] sm:$0xff] }
  0xad   :  { %1657 = vmatpush.msra.mxu3 %v3633_v34  ;;  %v3722_v1 = vand.u32 4294901760, %v68_v18 }
  0xae   :  { %1607 = vmatpush.msra.mxu2 %v3649_v43  ;;  %1476 = vmatpush.msra.mxu0 %v3664_v6  ;;  %v117_v43 = vld [vmem:[#allocation7 + $0x1a8] sm:$0xff] }
  0xaf   :  { %1078 = vmatmul.f32.gmra.mxu0 %v3132_v55  ;;  %1115 = vmatmul.f32.vlgmr.msra.gmra.mxu1 %v3080_v28 }
  0xb0   :  { %1249 = vmatmul.f32.gmra.mxu3 %v3132_v55  ;;  %1531 = vmatpush.msra.mxu1 %v1530_v38  ;;  %v307_v38 = vadd.f32 %v3613_v22, %v257_v5  ;;  %v1560_v22 = vand.u32 4294901760, %v1559_v33 }
  0xb1   :  { %1168 = vmatmul.f32.gmra.mxu2 %v3212_v13  ;;  %v3646_v31 = vpop.f32.mrf.mxu3  ;;  %1659 = vmatpush.msra.mxu3 %v3664_v6 }
  0xb2   :  { %1537 = vmatpush.msra.mxu1 %v1536_v2  ;;  %1610 = vmatpush.msra.mxu2 %v3676_v40  ;;  %v1554_v2 = vand.u32 4294901760, %v1553_v11  ;;  %v353_v5 = vadd.f32 %v3615_v29, %v307_v38  ;;  %v3760_v38 = vstv %s3715_s1 }
  0xb3   :  { %v3637_v8 = vpop.f32.mrf.mxu1  ;;  %v3644_v35 = vpop.f32.mrf.mxu2  ;;  %1478 = vmatpush.msra.mxu0 %v3669_v23  ;;  %1661 = vmatpush.msra.mxu3 %v3669_v23 }
  0xb4   :  { %v3635_v54 = vpop.f32.mrf.mxu0  ;;  %1543 = vmatpush.msra.mxu1 %v1542_v50  ;;  %1613 = vmatpush.msra.mxu2 %v3685_v17  ;;  %v3737_v50 = vsub.f32 %v68_v18, %v3722_v1  ;;  %v261_v27 = vadd.f32 %v3637_v8, %v3609_v51  ;;  %v125_v18 = vld [vmem:[#allocation7 + $0x1e8] sm:$0xff] }
  0xb5   :  { %1480 = vmatpush.msra.mxu0 %v3696_v57  ;;  %1663 = vmatpush.msra.mxu3 %v3696_v57  ;;  %v3757_v29 = vand.u32 4294901760, %v125_v18 }
  0xb6   :  { %1549 = vmatpush.msra.mxu1 %v1548_v49  ;;  %1616 = vmatpush.msra.mxu2 %v3705_v9  ;;  %v4408_v4 = vand.u32 4294901760, %v3737_v50  ;;  %v1566_v49 = vand.u32 4294901760, %v1565_v24  ;;  %v85_v9 = vld [vmem:[#allocation7 + $0xa8] sm:$0xff] }
  0xb7   :  { %1082 = vmatmul.f32.gmra.mxu0 %v3159_v12  ;;  %1119 = vmatmul.f32.gmra.mxu1 %v3132_v55 }
  0xb8   :  { %1253 = vmatmul.f32.gmra.mxu3 %v3159_v12  ;;  %1482 = vmatpush.msra.mxu0 %v3707_v10  ;;  %v1571_v11 = vsub.f32 %v3737_v50, %v4408_v4 }
  0xb9   :  { %1176 = vmatmul.f32.gmra.mxu2 %v3255_v3  ;;  %v3681_v47 = vpop.f32.mrf.mxu3  ;;  %1555 = vmatpush.msra.mxu1 %v1554_v2 }
  0xba   :  { %1619 = vmatpush.msra.mxu2 %v3720_v59  ;;  %1665 = vmatpush.msra.mxu3 %v3707_v10  ;;  %v1572_v33 = vand.u32 4294901760, %v1571_v11 }
  0xbb   :  { %v3673_v39 = vpop.f32.mrf.mxu1  ;;  %v3679_v44 = vpop.f32.mrf.mxu2  ;;  %1484 = vmatpush.msra.mxu0 %v3722_v1  ;;  %1561 = vmatpush.msra.mxu1 %v1560_v22  ;;  %v312_v22 = vadd.f32 %v3644_v35, %v261_v27 }
  0xbc   :  { %v3671_v15 = vpop.f32.mrf.mxu0  ;;  %1622 = vmatpush.msra.mxu2 %v3737_v50  ;;  %1667 = vmatpush.msra.mxu3 %v3722_v1  ;;  %v265_v35 = vadd.f32 %v3673_v39, %v3635_v54  ;;  %v3793_v54 = vand.u32 4294901760, %v117_v43 }
  0xbd   :  { %1567 = vmatpush.msra.mxu1 %v1566_v49 }
  0xbe   :  { %v317_v39 = vadd.f32 %v3679_v44, %v265_v35  ;;  %v3805_v40 = vsub.f32 %v117_v43, %v3793_v54  ;;  %v101_v44 = vld [vmem:[#allocation7 + $0x128] sm:$0xff]  ;;  %v4411_v43 = vand.u32 4294901760, %v3737_v50 }
  0xbf   :  { %1086 = vmatmul.f32.gmra.mxu0 %v3214_v32  ;;  %1123 = vmatmul.f32.gmra.mxu1 %v3159_v12 }
  0xc0   :  { %1257 = vmatmul.f32.gmra.mxu3 %v3214_v32  ;;  %1573 = vmatpush.msra.mxu1 %v1572_v33 }
  0xc1   :  { %1184 = vmatmul.f32.gmra.mxu2 %v3288_v20  ;;  %v3727_v61 = vpop.f32.mrf.mxu3 }
  0xc3   :  { %v3713_v30 = vpop.f32.mrf.mxu1  ;;  %v3725_v53 = vpop.f32.mrf.mxu2 }
  0xc4   :  { %v415_v56 = vpop.f32.mrf.mxu0 }
  0xc5   :  { %v416_v2 = vadd.f32 %v415_v56, %v353_v5  ;;  %v3771_v5 = vsub.f32 %v125_v18, %v3757_v29 }
  0xc7   :  { %1127 = vmatmul.f32.gmra.mxu1 %v3214_v32  ;;  %1295 = vmatmul.f32.vlgmr.msrb.gmra.mxu0 %v3103_v37  ;;  %v1858_v46 = vand.u32 4294901760, %v3771_v5 }
  0xc8   :  { %1445 = vmatmul.f32.vlgmr.msrb.gmra.mxu3 %v3080_v28  ;;  %1704 = vmatpush.msrb.mxu0 %v1528_v58  ;;  %v359_v58 = vadd.f32 %v3646_v31, %v312_v22 }
  0xc9   :  { %1404 = vmatmul.f32.vlgmr.msrb.gmra.mxu2 %v3080_v28  ;;  %v3767_v56 = vpop.f32.mrf.mxu3  ;;  %v1859_v26 = vsub.f32 %v3771_v5, %v1858_v46 }
  0xca   :  { %1800 = vmatpush.msrb.mxu2 %v3757_v29  ;;  %1708 = vmatpush.msrb.mxu0 %v1534_v48 }
  0xcb   :  { %v456_v8 = vpop.f32.mrf.mxu1  ;;  %v3765_v4 = vpop.f32.mrf.mxu2  ;;  %v1860_v48 = vand.u32 4294901760, %v1859_v26 }
  0xcc   :  { %v419_v51 = vpop.f32.mrf.mxu0  ;;  %v457_v24 = vadd.f32 %v456_v8, %v416_v2  ;;  %1712 = vmatpush.msrb.mxu0 %v1540_v52  ;;  %1802 = vmatpush.msrb.mxu2 %v3793_v54  ;;  %v1864_v2 = vand.u32 4294901760, %v3805_v40  ;;  %v93_v8 = vld [vmem:[#allocation7 + $0xe8] sm:$0xff] }
  0xcd   :  { %1861 = vmatpush.msrb.mxu3 %v1860_v48  ;;  %v3835_v22 = vand.u32 4294901760, %v93_v8  ;;  %v77_v48 = vld [vmem:[#allocation7 + $0x68] sm:$0xff] }
  0xce   :  { %v2783_v49 = vadd.f32 %v3760_v38, %v457_v24  ;;  %1716 = vmatpush.msrb.mxu0 %v1546_v25  ;;  %v1865_v33 = vsub.f32 %v3805_v40, %v1864_v2  ;;  %v3870_v50 = vand.u32 4294901760, %v77_v48 }
  0xcf   :  { %1300 = vmatmul.f32.gmra.mxu0 %v3147_v0  ;;  %1341 = vmatmul.f32.vlgmr.msrb.gmra.mxu1 %v3115_v45  ;;  %v3846_v35 = vsub.f32 %v93_v8, %v3835_v22 }
  0xd0   :  { %1759 = vmatpush.msrb.mxu1 %v3607_v42  ;;  %2787 = vst [vmem:[#allocation9] sm:$0xff] %v2783_v49  ;;  %1449 = vmatmul.f32.gmra.mxu3 %v3132_v55  ;;  %v420_v42 = vadd.f32 %v419_v51, %v359_v58  ;;  %v269_v51 = vadd.f32 %v3713_v30, %v3671_v15  ;;  %v1866_v24 = vand.u32 4294901760, %v1865_v33 }
  0xd1   :  { %1408 = vmatmul.f32.gmra.mxu2 %v3132_v55  ;;  %v3799_v18 = vpop.f32.mrf.mxu3  ;;  %1720 = vmatpush.msrb.mxu0 %v1552_v19  ;;  %v3818_v19 = vand.u32 4294901760, %v101_v44 }
  0xd2   :  { %1761 = vmatpush.msrb.mxu1 %v3628_v63  ;;  %v109_v63 = vld [vmem:[#allocation7 + $0x168] sm:$0xff]  ;;  %1867 = vmatpush.msrb.mxu3 %v1866_v24 }
  0xd3   :  { %v460_v52 = vpop.f32.mrf.mxu1  ;;  %v3797_v11 = vpop.f32.mrf.mxu2  ;;  %v3807_v25 = vand.u32 4294901760, %v109_v63  ;;  %1724 = vmatpush.msrb.mxu0 %v1558_v21 }
  0xd4   :  { %v423_v31 = vpop.f32.mrf.mxu0  ;;  %1763 = vmatpush.msrb.mxu1 %v3633_v34  ;;  %v461_v27 = vadd.f32 %v460_v52, %v420_v42 }
  0xd5   :  { %1804 = vmatpush.msrb.mxu2 %v3807_v25  ;;  %v3816_v17 = vsub.f32 %v109_v63, %v3807_v25  ;;  %1728 = vmatpush.msrb.mxu0 %v1564_v41  ;;  %v3855_v41 = vand.u32 4294901760, %v85_v9 }
  0xd6   :  { %1765 = vmatpush.msrb.mxu1 %v3664_v6  ;;  %v2785_v34 = vadd.f32 %v3760_v38, %v461_v27  ;;  %v365_v6 = vadd.f32 %v3681_v47, %v317_v39  ;;  %v3833_v47 = vsub.f32 %v101_v44, %v3818_v19  ;;  %v69_v27 = vld [vmem:[#allocation7 + $0x28] sm:$0xff] }
  0xd7   :  { %1305 = vmatmul.f32.gmra.mxu0 %v3178_v36  ;;  %1347 = vmatmul.f32.gmra.mxu1 %v3167_v14  ;;  %v3868_v39 = vsub.f32 %v85_v9, %v3855_v41 }
  0xd8   :  { %1767 = vmatpush.msrb.mxu1 %v3669_v23  ;;  %2789 = vst [vmem:[#allocation9 + $0x10] sm:$0xff] %v2785_v34  ;;  %1453 = vmatmul.f32.gmra.mxu3 %v3159_v12  ;;  %v1870_v23 = vand.u32 4294901760, %v3816_v17  ;;  %v424_v15 = vadd.f32 %v423_v31, %v365_v6  ;;  %v1876_v58 = vand.u32 4294901760, %v3833_v47 }
  0xd9   :  { %1412 = vmatmul.f32.gmra.mxu2 %v3159_v12  ;;  %v3852_v59 = vpop.f32.mrf.mxu3  ;;  %1732 = vmatpush.msrb.mxu0 %v4411_v43  ;;  %v1888_v6 = vand.u32 4294901760, %v3868_v39 }
  0xda   :  { %1769 = vmatpush.msrb.mxu1 %v3696_v57  ;;  %1806 = vmatpush.msrb.mxu2 %v3818_v19  ;;  %v1871_v49 = vsub.f32 %v3816_v17, %v1870_v23  ;;  %v322_v57 = vadd.f32 %v3725_v53, %v269_v51  ;;  %v1882_v53 = vand.u32 4294901760, %v3846_v35  ;;  %v3882_v51 = vsub.f32 %v77_v48, %v3870_v50 }
  0xdb   :  { %v464_v21 = vpop.f32.mrf.mxu1  ;;  %v3850_v42 = vpop.f32.mrf.mxu2 }
  0xdc   :  { %v427_v30 = vpop.f32.mrf.mxu0  ;;  %1771 = vmatpush.msrb.mxu1 %v3707_v10  ;;  %v465_v26 = vadd.f32 %v464_v21, %v424_v15  ;;  %1808 = vmatpush.msrb.mxu2 %v3835_v22  ;;  %v1872_v31 = vand.u32 4294901760, %v1871_v49  ;;  %v1877_v10 = vsub.f32 %v3833_v47, %v1876_v58  ;;  %v1883_v34 = vsub.f32 %v3846_v35, %v1882_v53 }
  0xdd   :  { %v371_v44 = vadd.f32 %v3727_v61, %v322_v57  ;;  %v1889_v61 = vsub.f32 %v3868_v39, %v1888_v6  ;;  %v1894_v9 = vand.u32 4294901760, %v3882_v51 }
  0xde   :  { %1773 = vmatpush.msrb.mxu1 %v3722_v1  ;;  %v2826_v52 = vadd.f32 %v3760_v38, %v465_v26  ;;  %1873 = vmatpush.msrb.mxu3 %v1872_v31  ;;  %v1878_v63 = vand.u32 4294901760, %v1877_v10  ;;  %v3876_v1 = vand.u32 4294901760, %v69_v27  ;;  %v1884_v8 = vand.u32 4294901760, %v1883_v34 }
  0xdf   :  { %1310 = vmatmul.f32.gmra.mxu0 %v3238_v16  ;;  %1353 = vmatmul.f32.gmra.mxu1 %v3207_v7  ;;  %v428_v15 = vadd.f32 %v427_v30, %v371_v44  ;;  %v1890_v43 = vand.u32 4294901760, %v1889_v61  ;;  %v1895_v30 = vsub.f32 %v3882_v51, %v1894_v9 }
  0xe0   :  { %1810 = vmatpush.msrb.mxu2 %v3855_v41  ;;  %2831 = vst [vmem:[#allocation9 + $0x80] sm:$0xff] %v2826_v52  ;;  %1457 = vmatmul.f32.gmra.mxu3 %v3214_v32  ;;  %v3886_v33 = vsub.f32 %v69_v27, %v3876_v1 }
  0xe1   :  { %1416 = vmatmul.f32.gmra.mxu2 %v3214_v32  ;;  %1879 = vmatpush.msrb.mxu3 %v1878_v63  ;;  %v1896_v52 = vand.u32 4294901760, %v1895_v30  ;;  %v587_v63 = vadd.f32 %v3767_v56, %v3765_v4  ;;  %v591_v56 = vadd.f32 %v3799_v18, %v3797_v11 }
  0xe2   :  { %1812 = vmatpush.msrb.mxu2 %v3870_v50  ;;  %v1900_v49 = vand.u32 4294901760, %v3886_v33  ;;  %v3896_v48 = vpop.f32.mrf.mxu3 }
  0xe3   :  { %v468_v21 = vpop.f32.mrf.mxu1  ;;  %1885 = vmatpush.msrb.mxu3 %v1884_v8  ;;  %v3894_v26 = vpop.f32.mrf.mxu2 }
  0xe4   :  { %v636_v24 = vpop.f32.mrf.mxu0  ;;  %v469_v57 = vadd.f32 %v468_v21, %v428_v15  ;;  %1814 = vmatpush.msrb.mxu2 %v3876_v1  ;;  %v1901_v31 = vsub.f32 %v3886_v33, %v1900_v49 }
  0xe5   :  { %1891 = vmatpush.msrb.mxu3 %v1890_v43  ;;  %v637_v34 = vadd.f32 %v636_v24, %v587_v63  ;;  %v118_v63 = vld [vmem:[#allocation7 + $0x1b0] sm:$0xff] }
  0xe6   :  { %v2828_v10 = vadd.f32 %v3760_v38, %v469_v57  ;;  %v1902_v27 = vand.u32 4294901760, %v1901_v31 }
  0xe7   :  { %1359 = vmatmul.f32.gmra.mxu1 %v3259_v60  ;;  %1490 = vmatmul.f32.vlgmr.msra.gmra.mxu0 %v3143_v62 }
  0xe8   :  { %1931 = vmatpush.msra.mxu0 %v3771_v5  ;;  %2833 = vst [vmem:[#allocation9 + $0x90] sm:$0xff] %v2828_v10  ;;  %1671 = vmatmul.f32.vlgmr.msra.gmra.mxu3 %v3115_v45 }
  0xe9   :  { %1625 = vmatmul.f32.vlgmr.msra.gmra.mxu2 %v3103_v37  ;;  %1897 = vmatpush.msrb.mxu3 %v1896_v52 }
  0xea   :  { %2034 = vmatpush.msra.mxu2 %v1858_v46  ;;  %1934 = vmatpush.msra.mxu0 %v3805_v40  ;;  %v786_v21 = vpop.f32.mrf.mxu3 }
  0xeb   :  { %v682_v8 = vpop.f32.mrf.mxu1  ;;  %1903 = vmatpush.msrb.mxu3 %v1902_v27  ;;  %v745_v61 = vpop.f32.mrf.mxu2 }
  0xec   :  { %v641_v44 = vpop.f32.mrf.mxu0  ;;  %v683_v15 = vadd.f32 %v682_v8, %v637_v34  ;;  %2038 = vmatpush.msra.mxu2 %v1864_v2  ;;  %1937 = vmatpush.msra.mxu0 %v3816_v17  ;;  %v4001_v34 = vand.u32 4294901760, %v118_v63 }
  0xed   :  { %2089 = vmatpush.msra.mxu3 %v3757_v29  ;;  %v642_v46 = vadd.f32 %v641_v44, %v591_v56  ;;  %v110_v44 = vld [vmem:[#allocation7 + $0x170] sm:$0xff] }
  0xee   :  { %v746_v4 = vadd.f32 %v745_v61, %v683_v15  ;;  %2042 = vmatpush.msra.mxu2 %v1870_v23  ;;  %1940 = vmatpush.msra.mxu0 %v3833_v47  ;;  %v4006_v15 = vand.u32 4294901760, %v110_v44 }
  0xef   :  { %1498 = vmatmul.f32.gmra.mxu0 %v3212_v13  ;;  %1575 = vmatmul.f32.vlgmr.msra.gmra.mxu1 %v3080_v28 }
  0xf0   :  { %1983 = vmatpush.msra.mxu1 %v3757_v29  ;;  %2091 = vmatpush.msra.mxu3 %v3793_v54  ;;  %v787_v5 = vadd.f32 %v786_v21, %v746_v4  ;;  %v4013_v4 = vsub.f32 %v118_v63, %v4001_v34 }
  0xf1   :  { %1677 = vmatmul.f32.gmra.mxu3 %v3167_v14  ;;  %1630 = vmatmul.f32.gmra.mxu2 %v3147_v0 }
  0xf2   :  { %1985 = vmatpush.msra.mxu1 %v3793_v54  ;;  %v2784_v40 = vadd.f32 %v3760_v38, %v787_v5  ;;  %2093 = vmatpush.msra.mxu3 %v3807_v25 }
  0xf3   :  { %2046 = vmatpush.msra.mxu2 %v1876_v58  ;;  %v688_v11 = vpop.f32.mrf.mxu1  ;;  %v749_v2 = vpop.f32.mrf.mxu2  ;;  %1943 = vmatpush.msra.mxu0 %v3846_v35 }
  0xf4   :  { %v646_v29 = vpop.f32.mrf.mxu0  ;;  %1987 = vmatpush.msra.mxu1 %v3807_v25  ;;  %2788 = vst [vmem:[#allocation9 + $0x8] sm:$0xff] %v2784_v40  ;;  %v689_v18 = vadd.f32 %v688_v11, %v642_v46  ;;  %v790_v17 = vpop.f32.mrf.mxu3  ;;  %2095 = vmatpush.msra.mxu3 %v3818_v19  ;;  %v595_v25 = vadd.f32 %v3852_v59, %v3850_v42 }
  0xf5   :  { %2050 = vmatpush.msra.mxu2 %v1882_v53  ;;  %1946 = vmatpush.msra.mxu0 %v3868_v39  ;;  %v599_v53 = vadd.f32 %v3896_v48, %v3894_v26  ;;  %v126_v26 = vld [vmem:[#allocation7 + $0x1f0] sm:$0xff]  ;;  %v4022_v40 = vsub.f32 %v110_v44, %v4006_v15 }
  0xf6   :  { %1989 = vmatpush.msra.mxu1 %v3818_v19  ;;  %v750_v54 = vadd.f32 %v749_v2, %v689_v18  ;;  %2097 = vmatpush.msra.mxu3 %v3835_v22  ;;  %v647_v19 = vadd.f32 %v646_v29, %v595_v25  ;;  %v3980_v43 = vand.u32 4294901760, %v126_v26  ;;  %v2194_v29 = vand.u32 4294901760, %v4013_v4  ;;  %v102_v2 = vld [vmem:[#allocation7 + $0x130] sm:$0xff] }
  0xf7   :  { %1506 = vmatmul.f32.gmra.mxu0 %v3255_v3  ;;  %1579 = vmatmul.f32.gmra.mxu1 %v3132_v55  ;;  %v2200_v18 = vand.u32 4294901760, %v4022_v40  ;;  %v94_v25 = vld [vmem:[#allocation7 + $0xf0] sm:$0xff] }
  0xf8   :  { %1991 = vmatpush.msra.mxu1 %v3835_v22  ;;  %v791_v23 = vadd.f32 %v790_v17, %v750_v54  ;;  %2054 = vmatpush.msra.mxu2 %v1888_v6  ;;  %v3991_v27 = vsub.f32 %v126_v26, %v3980_v43  ;;  %v2195_v11 = vsub.f32 %v4013_v4, %v2194_v29  ;;  %v4037_v54 = vand.u32 4294901760, %v102_v2 }
  0xf9   :  { %1683 = vmatmul.f32.gmra.mxu3 %v3207_v7  ;;  %1635 = vmatmul.f32.gmra.mxu2 %v3178_v36 }
  0xfa   :  { %v2786_v47 = vadd.f32 %v3760_v38, %v791_v23  ;;  %2099 = vmatpush.msra.mxu3 %v3855_v41  ;;  %1993 = vmatpush.msra.mxu1 %v3855_v41  ;;  %v2196_v17 = vand.u32 4294901760, %v2195_v11  ;;  %v2201_v23 = vsub.f32 %v4022_v40, %v2200_v18 }
  0xfb   :  { %v694_v58 = vpop.f32.mrf.mxu1  ;;  %2058 = vmatpush.msra.mxu2 %v1894_v9  ;;  %1949 = vmatpush.msra.mxu0 %v3882_v51  ;;  %v753_v42 = vpop.f32.mrf.mxu2 }
  0xfc   :  { %v651_v22 = vpop.f32.mrf.mxu0  ;;  %2790 = vst [vmem:[#allocation9 + $0x18] sm:$0xff] %v2786_v47  ;;  %v695_v35 = vadd.f32 %v694_v58, %v647_v19  ;;  %v794_v59 = vpop.f32.mrf.mxu3  ;;  %2101 = vmatpush.msra.mxu3 %v3870_v50  ;;  %1995 = vmatpush.msra.mxu1 %v3870_v50  ;;  %v4042_v19 = vand.u32 4294901760, %v94_v25  ;;  %v4049_v58 = vsub.f32 %v102_v2, %v4037_v54 }
  0xfd   :  { %1952 = vmatpush.msra.mxu0 %v3886_v33  ;;  %2062 = vmatpush.msra.mxu2 %v1900_v49  ;;  %v652_v50 = vadd.f32 %v651_v22, %v599_v53 }
  0xfe   :  { %v754_v41 = vadd.f32 %v753_v42, %v695_v35  ;;  %2103 = vmatpush.msra.mxu3 %v3876_v1  ;;  %1997 = vmatpush.msra.mxu1 %v3876_v1  ;;  %v2206_v53 = vand.u32 4294901760, %v4049_v58 }
  0xff   :  { %1514 = vmatmul.f32.gmra.mxu0 %v3288_v20  ;;  %1583 = vmatmul.f32.gmra.mxu1 %v3159_v12 }
 0x100   :  { %v795_v39 = vadd.f32 %v794_v59, %v754_v41  ;;  %v2202_v59 = vand.u32 4294901760, %v2201_v23  ;;  %v4058_v41 = vsub.f32 %v94_v25, %v4042_v19 }
 0x101   :  { %1689 = vmatmul.f32.gmra.mxu3 %v3259_v60  ;;  %1640 = vmatmul.f32.gmra.mxu2 %v3238_v16 }
 0x102   :  { %v2827_v6 = vadd.f32 %v3760_v38, %v795_v39  ;;  %v86_v39 = vld [vmem:[#allocation7 + $0xb0] sm:$0xff] }
 0x103   :  { %v700_v51 = vpop.f32.mrf.mxu1  ;;  %v757_v24 = vpop.f32.mrf.mxu2 }
 0x104   :  { %v3973_v33 = vpop.f32.mrf.mxu0  ;;  %2832 = vst [vmem:[#allocation9 + $0x88] sm:$0xff] %v2827_v6  ;;  %v701_v9 = vadd.f32 %v700_v51, %v652_v50  ;;  %v798_v49 = vpop.f32.mrf.mxu3  ;;  %v2207_v50 = vsub.f32 %v4049_v58, %v2206_v53  ;;  %v4069_v6 = vand.u32 4294901760, %v86_v39 }
 0x106   :  { %v758_v57 = vadd.f32 %v757_v24, %v701_v9  ;;  %v2212_v9 = vand.u32 4294901760, %v4058_v41  ;;  %v78_v24 = vld [vmem:[#allocation7 + $0x70] sm:$0xff] }
 0x107   :  { %1587 = vmatmul.f32.gmra.mxu1 %v3214_v32  ;;  %1734 = vmatmul.f32.vlgmr.msrb.gmra.mxu0 %v3080_v28 }
 0x108   :  { %v799_v1 = vadd.f32 %v798_v49, %v758_v57  ;;  %2130 = vmatpush.msrb.mxu0 %v3980_v43  ;;  %v2208_v49 = vand.u32 4294901760, %v2207_v50  ;;  %v4078_v57 = vsub.f32 %v86_v39, %v4069_v6  ;;  %v2213_v26 = vsub.f32 %v4058_v41, %v2212_v9 }
 0x109   :  { %1905 = vmatmul.f32.vlgmr.msrb.gmra.mxu3 %v3080_v28  ;;  %1820 = vmatmul.f32.vlgmr.msrb.gmra.mxu2 %v3143_v62 }
 0x10a   :  { %v2829_v48 = vadd.f32 %v3760_v38, %v799_v1  ;;  %2313 = vmatpush.msrb.mxu3 %v3980_v43  ;;  %2261 = vmatpush.msrb.mxu2 %v3991_v27  ;;  %v2188_v38 = vand.u32 4294901760, %v3991_v27  ;;  %v4080_v1 = vand.u32 4294901760, %v78_v24  ;;  %v2218_v63 = vand.u32 4294901760, %v4078_v57 }
 0x10b   :  { %v3984_v31 = vpop.f32.mrf.mxu1  ;;  %2132 = vmatpush.msrb.mxu0 %v4001_v34 }
 0x10c   :  { %v3982_v30 = vpop.f32.mrf.mxu0  ;;  %2834 = vst [vmem:[#allocation9 + $0x98] sm:$0xff] %v2829_v48  ;;  %v3986_v10 = vpop.f32.mrf.mxu2  ;;  %v2189_v8 = vsub.f32 %v3991_v27, %v2188_v38  ;;  %2315 = vmatpush.msrb.mxu3 %v4001_v34  ;;  %2264 = vmatpush.msrb.mxu2 %v4013_v4  ;;  %v917_v51 = vadd.f32 %v3984_v31, %v3973_v33  ;;  %v70_v33 = vld [vmem:[#allocation7 + $0x30] sm:$0xff] }
 0x10d   :  { %v3988_v52 = vpop.f32.mrf.mxu3  ;;  %2134 = vmatpush.msrb.mxu0 %v4006_v15  ;;  %v4093_v44 = vsub.f32 %v78_v24, %v4080_v1  ;;  %v2219_v25 = vsub.f32 %v4078_v57, %v2218_v63 }
 0x10e   :  { %v2190_v46 = vand.u32 4294901760, %v2189_v8  ;;  %2267 = vmatpush.msrb.mxu2 %v4022_v40  ;;  %2317 = vmatpush.msrb.mxu3 %v4006_v15  ;;  %v4095_v8 = vand.u32 4294901760, %v70_v33  ;;  %v119_v40 = vld [vmem:[#allocation7 + $0x1b8] sm:$0xff] }
 0x10f   :  { %1738 = vmatmul.f32.gmra.mxu0 %v3132_v55  ;;  %1775 = vmatmul.f32.vlgmr.msrb.gmra.mxu1 %v3080_v28  ;;  %v2224_v23 = vand.u32 4294901760, %v4093_v44 }
 0x110   :  { %2191 = vmatpush.msrb.mxu1 %v2190_v46  ;;  %2136 = vmatpush.msrb.mxu0 %v4037_v54  ;;  %v967_v46 = vadd.f32 %v3986_v10, %v917_v51  ;;  %v2220_v10 = vand.u32 4294901760, %v2219_v25 }
 0x111   :  { %1909 = vmatmul.f32.gmra.mxu3 %v3132_v55  ;;  %1828 = vmatmul.f32.gmra.mxu2 %v3212_v13  ;;  %v2225_v39 = vsub.f32 %v4093_v44, %v2224_v23 }
 0x112   :  { %2197 = vmatpush.msrb.mxu1 %v2196_v17  ;;  %2319 = vmatpush.msrb.mxu3 %v4037_v54  ;;  %v2214_v17 = vand.u32 4294901760, %v2213_v26  ;;  %v1013_v51 = vadd.f32 %v3988_v52, %v967_v46  ;;  %v4133_v46 = vstv %s4088_s2 }
 0x113   :  { %2270 = vmatpush.msrb.mxu2 %v4049_v58  ;;  %2138 = vmatpush.msrb.mxu0 %v4042_v19 }
 0x114   :  { %v4008_v61 = vpop.f32.mrf.mxu0  ;;  %v4010_v21 = vpop.f32.mrf.mxu1  ;;  %2203 = vmatpush.msrb.mxu1 %v2202_v59  ;;  %2321 = vmatpush.msrb.mxu3 %v4042_v19  ;;  %v4110_v59 = vsub.f32 %v70_v33, %v4095_v8  ;;  %v127_v33 = vld [vmem:[#allocation7 + $0x1f8] sm:$0xff] }
 0x115   :  { %v4017_v56 = vpop.f32.mrf.mxu2  ;;  %v4019_v5 = vpop.f32.mrf.mxu3  ;;  %2273 = vmatpush.msrb.mxu2 %v4058_v41  ;;  %2140 = vmatpush.msrb.mxu0 %v4069_v6  ;;  %v921_v24 = vadd.f32 %v4010_v21, %v3982_v30  ;;  %v4130_v52 = vand.u32 4294901760, %v127_v33 }
 0x116   :  { %2209 = vmatpush.msrb.mxu1 %v2208_v49  ;;  %2323 = vmatpush.msrb.mxu3 %v4069_v6  ;;  %v4409_v50 = vand.u32 4294901760, %v4110_v59  ;;  %v2226_v49 = vand.u32 4294901760, %v2225_v39 }
 0x117   :  { %1742 = vmatmul.f32.gmra.mxu0 %v3159_v12  ;;  %1779 = vmatmul.f32.gmra.mxu1 %v3132_v55 }
 0x118   :  { %2276 = vmatpush.msrb.mxu2 %v4078_v57  ;;  %2142 = vmatpush.msrb.mxu0 %v4080_v1  ;;  %v2231_v26 = vsub.f32 %v4110_v59, %v4409_v50  ;;  %v87_v57 = vld [vmem:[#allocation7 + $0xb8] sm:$0xff] }
 0x119   :  { %1913 = vmatmul.f32.gmra.mxu3 %v3159_v12  ;;  %1836 = vmatmul.f32.gmra.mxu2 %v3255_v3 }
 0x11a   :  { %2279 = vmatpush.msrb.mxu2 %v4093_v44  ;;  %2215 = vmatpush.msrb.mxu1 %v2214_v17  ;;  %v2232_v25 = vand.u32 4294901760, %v2231_v26 }
 0x11b   :  { %2325 = vmatpush.msrb.mxu3 %v4080_v1  ;;  %2144 = vmatpush.msrb.mxu0 %v4095_v8 }
 0x11c   :  { %v4044_v47 = vpop.f32.mrf.mxu0  ;;  %v4046_v22 = vpop.f32.mrf.mxu1  ;;  %2221 = vmatpush.msrb.mxu1 %v2220_v10  ;;  %2282 = vmatpush.msrb.mxu2 %v4110_v59  ;;  %v972_v10 = vadd.f32 %v4017_v56, %v921_v24 }
 0x11d   :  { %v4052_v35 = vpop.f32.mrf.mxu2  ;;  %v4054_v42 = vpop.f32.mrf.mxu3  ;;  %2327 = vmatpush.msrb.mxu3 %v4095_v8  ;;  %v925_v56 = vadd.f32 %v4046_v22, %v4008_v61  ;;  %v4166_v61 = vand.u32 4294901760, %v119_v40 }
 0x11e   :  { %2227 = vmatpush.msrb.mxu1 %v2226_v49 }
 0x11f   :  { %1746 = vmatmul.f32.gmra.mxu0 %v3214_v32  ;;  %1783 = vmatmul.f32.gmra.mxu1 %v3159_v12  ;;  %v977_v22 = vadd.f32 %v4052_v35, %v925_v56  ;;  %v4178_v58 = vsub.f32 %v119_v40, %v4166_v61  ;;  %v103_v35 = vld [vmem:[#allocation7 + $0x138] sm:$0xff]  ;;  %v4412_v40 = vand.u32 4294901760, %v4110_v59 }
 0x120   :  { %2233 = vmatpush.msrb.mxu1 %v2232_v25 }
 0x121   :  { %1917 = vmatmul.f32.gmra.mxu3 %v3214_v32  ;;  %1844 = vmatmul.f32.gmra.mxu2 %v3288_v20 }
 0x124   :  { %v4086_v48 = vpop.f32.mrf.mxu1  ;;  %v1075_v31 = vpop.f32.mrf.mxu0 }
 0x125   :  { %v4098_v11 = vpop.f32.mrf.mxu2  ;;  %v4100_v2 = vpop.f32.mrf.mxu3  ;;  %v1076_v17 = vadd.f32 %v1075_v31, %v1013_v51  ;;  %v4144_v51 = vsub.f32 %v127_v33, %v4130_v52 }
 0x127   :  { %1787 = vmatmul.f32.gmra.mxu1 %v3214_v32  ;;  %1955 = vmatmul.f32.vlgmr.msra.gmra.mxu0 %v3103_v37  ;;  %v2518_v27 = vand.u32 4294901760, %v4144_v51 }
 0x128   :  { %2364 = vmatpush.msra.mxu0 %v2188_v38  ;;  %v1019_v38 = vadd.f32 %v4019_v5, %v972_v10 }
 0x129   :  { %2105 = vmatmul.f32.vlgmr.msra.gmra.mxu3 %v3080_v28  ;;  %2064 = vmatmul.f32.vlgmr.msra.gmra.mxu2 %v3080_v28  ;;  %v2519_v4 = vsub.f32 %v4144_v51, %v2518_v27 }
 0x12a   :  { %2460 = vmatpush.msra.mxu2 %v4130_v52  ;;  %2368 = vmatpush.msra.mxu0 %v2194_v29 }
 0x12b   :  { %v2520_v29 = vand.u32 4294901760, %v2519_v4 }
 0x12c   :  { %v1079_v30 = vpop.f32.mrf.mxu0  ;;  %v1116_v21 = vpop.f32.mrf.mxu1  ;;  %2372 = vmatpush.msra.mxu0 %v2200_v18  ;;  %2462 = vmatpush.msra.mxu2 %v4166_v61 }
 0x12d   :  { %v1117_v39 = vadd.f32 %v1116_v21, %v1076_v17  ;;  %v4138_v50 = vpop.f32.mrf.mxu2  ;;  %v4140_v31 = vpop.f32.mrf.mxu3  ;;  %2521 = vmatpush.msra.mxu3 %v2520_v29  ;;  %v2524_v17 = vand.u32 4294901760, %v4178_v58  ;;  %v95_v21 = vld [vmem:[#allocation7 + $0xf8] sm:$0xff] }
 0x12e   :  { %2376 = vmatpush.msra.mxu0 %v2206_v53  ;;  %v4208_v10 = vand.u32 4294901760, %v95_v21  ;;  %v79_v29 = vld [vmem:[#allocation7 + $0x78] sm:$0xff] }
 0x12f   :  { %v2793_v49 = vadd.f32 %v4133_v46, %v1117_v39  ;;  %1960 = vmatmul.f32.gmra.mxu0 %v3147_v0  ;;  %2001 = vmatmul.f32.vlgmr.msra.gmra.mxu1 %v3115_v45  ;;  %v2525_v25 = vsub.f32 %v4178_v58, %v2524_v17  ;;  %v4243_v59 = vand.u32 4294901760, %v79_v29 }
 0x130   :  { %2419 = vmatpush.msra.mxu1 %v3980_v43  ;;  %v1080_v43 = vadd.f32 %v1079_v30, %v1019_v38  ;;  %2380 = vmatpush.msra.mxu0 %v2212_v9  ;;  %v4191_v9 = vand.u32 4294901760, %v103_v35  ;;  %v929_v30 = vadd.f32 %v4086_v48, %v4044_v47  ;;  %v4219_v56 = vsub.f32 %v95_v21, %v4208_v10 }
 0x131   :  { %2798 = vst [vmem:[#allocation9 + $0x20] sm:$0xff] %v2793_v49  ;;  %2109 = vmatmul.f32.gmra.mxu3 %v3132_v55  ;;  %2068 = vmatmul.f32.gmra.mxu2 %v3132_v55  ;;  %v2526_v39 = vand.u32 4294901760, %v2525_v25 }
 0x132   :  { %2421 = vmatpush.msra.mxu1 %v4001_v34  ;;  %v111_v34 = vld [vmem:[#allocation7 + $0x178] sm:$0xff]  ;;  %2384 = vmatpush.msra.mxu0 %v2218_v63 }
 0x133   :  { %v4180_v53 = vand.u32 4294901760, %v111_v34  ;;  %2527 = vmatpush.msra.mxu3 %v2526_v39 }
 0x134   :  { %v1083_v5 = vpop.f32.mrf.mxu0  ;;  %v1120_v18 = vpop.f32.mrf.mxu1  ;;  %2423 = vmatpush.msra.mxu1 %v4006_v15  ;;  %2388 = vmatpush.msra.mxu0 %v2224_v23  ;;  %v4228_v23 = vand.u32 4294901760, %v87_v57 }
 0x135   :  { %v1121_v24 = vadd.f32 %v1120_v18, %v1080_v43  ;;  %v4170_v26 = vpop.f32.mrf.mxu2  ;;  %v4172_v33 = vpop.f32.mrf.mxu3  ;;  %2464 = vmatpush.msra.mxu2 %v4180_v53  ;;  %v4189_v41 = vsub.f32 %v111_v34, %v4180_v53 }
 0x136   :  { %2425 = vmatpush.msra.mxu1 %v4037_v54  ;;  %v1025_v54 = vadd.f32 %v4054_v42, %v977_v22  ;;  %v4206_v42 = vsub.f32 %v103_v35, %v4191_v9  ;;  %2392 = vmatpush.msra.mxu0 %v4412_v40  ;;  %v4241_v22 = vsub.f32 %v87_v57, %v4228_v23 }
 0x137   :  { %v2795_v15 = vadd.f32 %v4133_v46, %v1121_v24  ;;  %1965 = vmatmul.f32.gmra.mxu0 %v3178_v36  ;;  %2007 = vmatmul.f32.gmra.mxu1 %v3167_v14  ;;  %v71_v24 = vld [vmem:[#allocation7 + $0x38] sm:$0xff] }
 0x138   :  { %2427 = vmatpush.msra.mxu1 %v4042_v19  ;;  %v2530_v19 = vand.u32 4294901760, %v4189_v41  ;;  %v1084_v47 = vadd.f32 %v1083_v5, %v1025_v54  ;;  %2466 = vmatpush.msra.mxu2 %v4191_v9  ;;  %v2536_v38 = vand.u32 4294901760, %v4206_v42  ;;  %v2548_v54 = vand.u32 4294901760, %v4241_v22 }
 0x139   :  { %2800 = vst [vmem:[#allocation9 + $0x30] sm:$0xff] %v2795_v15  ;;  %2113 = vmatmul.f32.gmra.mxu3 %v3159_v12  ;;  %2072 = vmatmul.f32.gmra.mxu2 %v3159_v12 }
 0x13a   :  { %2429 = vmatpush.msra.mxu1 %v4069_v6  ;;  %v2531_v49 = vsub.f32 %v4189_v41, %v2530_v19  ;;  %v982_v6 = vadd.f32 %v4098_v11, %v929_v30  ;;  %2468 = vmatpush.msra.mxu2 %v4208_v10  ;;  %v2542_v11 = vand.u32 4294901760, %v4219_v56  ;;  %v4255_v30 = vsub.f32 %v79_v29, %v4243_v59 }
 0x13c   :  { %v1087_v48 = vpop.f32.mrf.mxu0  ;;  %v1124_v63 = vpop.f32.mrf.mxu1  ;;  %2431 = vmatpush.msra.mxu1 %v4080_v1  ;;  %v2532_v5 = vand.u32 4294901760, %v2531_v49  ;;  %v2537_v1 = vsub.f32 %v4206_v42, %v2536_v38  ;;  %v2543_v15 = vsub.f32 %v4219_v56, %v2542_v11  ;;  %2470 = vmatpush.msra.mxu2 %v4228_v23  ;;  %v1031_v35 = vadd.f32 %v4100_v2, %v982_v6 }
 0x13d   :  { %v1125_v4 = vadd.f32 %v1124_v63, %v1084_v47  ;;  %v4223_v43 = vpop.f32.mrf.mxu2  ;;  %v4225_v44 = vpop.f32.mrf.mxu3  ;;  %v2549_v2 = vsub.f32 %v4241_v22, %v2548_v54  ;;  %v2554_v57 = vand.u32 4294901760, %v4255_v30 }
 0x13e   :  { %2433 = vmatpush.msra.mxu1 %v4095_v8  ;;  %2533 = vmatpush.msra.mxu3 %v2532_v5  ;;  %v2538_v34 = vand.u32 4294901760, %v2537_v1  ;;  %v4249_v8 = vand.u32 4294901760, %v71_v24  ;;  %v2544_v21 = vand.u32 4294901760, %v2543_v15  ;;  %v1088_v47 = vadd.f32 %v1087_v48, %v1031_v35 }
 0x13f   :  { %v2837_v18 = vadd.f32 %v4133_v46, %v1125_v4  ;;  %1970 = vmatmul.f32.gmra.mxu0 %v3238_v16  ;;  %2013 = vmatmul.f32.gmra.mxu1 %v3207_v7  ;;  %v2550_v40 = vand.u32 4294901760, %v2549_v2  ;;  %v2555_v48 = vsub.f32 %v4255_v30, %v2554_v57 }
 0x140   :  { %2539 = vmatpush.msra.mxu3 %v2538_v34  ;;  %v4259_v25 = vsub.f32 %v71_v24, %v4249_v8  ;;  %2472 = vmatpush.msra.mxu2 %v4243_v59  ;;  %v1247_v34 = vadd.f32 %v4140_v31, %v4138_v50  ;;  %v1251_v31 = vadd.f32 %v4172_v33, %v4170_v26 }
 0x141   :  { %2842 = vst [vmem:[#allocation9 + $0xa0] sm:$0xff] %v2837_v18  ;;  %2117 = vmatmul.f32.gmra.mxu3 %v3214_v32  ;;  %2076 = vmatmul.f32.gmra.mxu2 %v3214_v32  ;;  %v2556_v18 = vand.u32 4294901760, %v2555_v48 }
 0x142   :  { %2545 = vmatpush.msra.mxu3 %v2544_v21  ;;  %v2560_v49 = vand.u32 4294901760, %v4259_v25  ;;  %2474 = vmatpush.msra.mxu2 %v4249_v8 }
 0x144   :  { %v1128_v63 = vpop.f32.mrf.mxu1  ;;  %v1296_v39 = vpop.f32.mrf.mxu0  ;;  %v2561_v5 = vsub.f32 %v4259_v25, %v2560_v49  ;;  %2551 = vmatpush.msra.mxu3 %v2550_v40 }
 0x145   :  { %v1129_v6 = vadd.f32 %v1128_v63, %v1088_v47  ;;  %v4267_v4 = vpop.f32.mrf.mxu2  ;;  %v4269_v29 = vpop.f32.mrf.mxu3  ;;  %v1297_v15 = vadd.f32 %v1296_v39, %v1247_v34 }
 0x146   :  { %v2562_v24 = vand.u32 4294901760, %v2561_v5  ;;  %2557 = vmatpush.msra.mxu3 %v2556_v18 }
 0x147   :  { %v2839_v1 = vadd.f32 %v4133_v46, %v1129_v6  ;;  %2019 = vmatmul.f32.gmra.mxu1 %v3259_v60  ;;  %2150 = vmatmul.f32.vlgmr.msrb.gmra.mxu0 %v3143_v62 }
 0x148   :  { %2591 = vmatpush.msrb.mxu0 %v4144_v51  ;;  %2563 = vmatpush.msra.mxu3 %v2562_v24 }
 0x149   :  { %2844 = vst [vmem:[#allocation9 + $0xb0] sm:$0xff] %v2839_v1  ;;  %2331 = vmatmul.f32.vlgmr.msrb.gmra.mxu3 %v3115_v45  ;;  %2285 = vmatmul.f32.vlgmr.msrb.gmra.mxu2 %v3103_v37 }
 0x14a   :  { %2694 = vmatpush.msrb.mxu2 %v2518_v27  ;;  %2594 = vmatpush.msrb.mxu0 %v4178_v58 }
 0x14b   :  { %2749 = vmatpush.msrb.mxu3 %v4130_v52 }
 0x14c   :  { %v1301_v35 = vpop.f32.mrf.mxu0  ;;  %v1342_v21 = vpop.f32.mrf.mxu1  ;;  %2698 = vmatpush.msrb.mxu2 %v2524_v17  ;;  %2597 = vmatpush.msrb.mxu0 %v4189_v41 }
 0x14d   :  { %v1343_v47 = vadd.f32 %v1342_v21, %v1297_v15  ;;  %v1405_v2 = vpop.f32.mrf.mxu2  ;;  %v1446_v63 = vpop.f32.mrf.mxu3  ;;  %2751 = vmatpush.msrb.mxu3 %v4166_v61  ;;  %v1302_v27 = vadd.f32 %v1301_v35, %v1251_v31 }
 0x14e   :  { %2702 = vmatpush.msrb.mxu2 %v2530_v19  ;;  %2600 = vmatpush.msrb.mxu0 %v4206_v42 }
 0x14f   :  { %v1406_v50 = vadd.f32 %v1405_v2, %v1343_v47  ;;  %2158 = vmatmul.f32.gmra.mxu0 %v3212_v13  ;;  %2235 = vmatmul.f32.vlgmr.msrb.gmra.mxu1 %v3080_v28 }
 0x150   :  { %2643 = vmatpush.msrb.mxu1 %v4130_v52  ;;  %2753 = vmatpush.msrb.mxu3 %v4180_v53 }
 0x151   :  { %v1447_v51 = vadd.f32 %v1446_v63, %v1406_v50  ;;  %2337 = vmatmul.f32.gmra.mxu3 %v3167_v14  ;;  %2290 = vmatmul.f32.gmra.mxu2 %v3147_v0 }
 0x152   :  { %2645 = vmatpush.msrb.mxu1 %v4166_v61  ;;  %2706 = vmatpush.msrb.mxu2 %v2536_v38 }
 0x153   :  { %v2794_v58 = vadd.f32 %v4133_v46, %v1447_v51  ;;  %2755 = vmatpush.msrb.mxu3 %v4191_v9  ;;  %2603 = vmatpush.msrb.mxu0 %v4219_v56 }
 0x154   :  { %v1306_v52 = vpop.f32.mrf.mxu0  ;;  %v1348_v26 = vpop.f32.mrf.mxu1  ;;  %2647 = vmatpush.msrb.mxu1 %v4180_v53  ;;  %2710 = vmatpush.msrb.mxu2 %v2542_v11  ;;  %v1255_v53 = vadd.f32 %v4225_v44, %v4223_v43  ;;  %v1259_v11 = vadd.f32 %v4269_v29, %v4267_v4 }
 0x155   :  { %2799 = vst [vmem:[#allocation9 + $0x28] sm:$0xff] %v2794_v58  ;;  %v1349_v33 = vadd.f32 %v1348_v26, %v1302_v27  ;;  %v1409_v17 = vpop.f32.mrf.mxu2  ;;  %v1450_v41 = vpop.f32.mrf.mxu3  ;;  %2757 = vmatpush.msrb.mxu3 %v4208_v10  ;;  %2606 = vmatpush.msrb.mxu0 %v4241_v22 }
 0x156   :  { %2649 = vmatpush.msrb.mxu1 %v4191_v9  ;;  %2714 = vmatpush.msrb.mxu2 %v2548_v54  ;;  %v1307_v9 = vadd.f32 %v1306_v52, %v1255_v53 }
 0x157   :  { %v1410_v61 = vadd.f32 %v1409_v17, %v1349_v33  ;;  %2166 = vmatmul.f32.gmra.mxu0 %v3255_v3  ;;  %2239 = vmatmul.f32.gmra.mxu1 %v3132_v55 }
 0x158   :  { %2651 = vmatpush.msrb.mxu1 %v4208_v10  ;;  %2759 = vmatpush.msrb.mxu3 %v4228_v23 }
 0x159   :  { %v1451_v19 = vadd.f32 %v1450_v41, %v1410_v61  ;;  %2343 = vmatmul.f32.gmra.mxu3 %v3207_v7  ;;  %2295 = vmatmul.f32.gmra.mxu2 %v3178_v36 }
 0x15a   :  { %2653 = vmatpush.msrb.mxu1 %v4228_v23  ;;  %2718 = vmatpush.msrb.mxu2 %v2554_v57 }
 0x15b   :  { %v2796_v42 = vadd.f32 %v4133_v46, %v1451_v19  ;;  %2609 = vmatpush.msrb.mxu0 %v4255_v30  ;;  %2761 = vmatpush.msrb.mxu3 %v4243_v59 }
 0x15c   :  { %v1311_v10 = vpop.f32.mrf.mxu0  ;;  %v1354_v38 = vpop.f32.mrf.mxu1  ;;  %2655 = vmatpush.msrb.mxu1 %v4243_v59  ;;  %2722 = vmatpush.msrb.mxu2 %v2560_v49 }
 0x15d   :  { %2801 = vst [vmem:[#allocation9 + $0x38] sm:$0xff] %v2796_v42  ;;  %v1355_v56 = vadd.f32 %v1354_v38, %v1307_v9  ;;  %v1413_v43 = vpop.f32.mrf.mxu2  ;;  %v1454_v44 = vpop.f32.mrf.mxu3  ;;  %2612 = vmatpush.msrb.mxu0 %v4259_v25  ;;  %2763 = vmatpush.msrb.mxu3 %v4249_v8  ;;  %v1312_v59 = vadd.f32 %v1311_v10, %v1259_v11 }
 0x15e   :  { %2657 = vmatpush.msrb.mxu1 %v4249_v8 }
 0x15f   :  { %v1414_v23 = vadd.f32 %v1413_v43, %v1355_v56  ;;  %2174 = vmatmul.f32.gmra.mxu0 %v3288_v20  ;;  %2243 = vmatmul.f32.gmra.mxu1 %v3159_v12 }
 0x161   :  { %v1455_v22 = vadd.f32 %v1454_v44, %v1414_v23  ;;  %2349 = vmatmul.f32.gmra.mxu3 %v3259_v60  ;;  %2300 = vmatmul.f32.gmra.mxu2 %v3238_v16 }
 0x163   :  { %v2838_v54 = vadd.f32 %v4133_v46, %v1455_v22 }
 0x164   :  { %v1360_v30 = vpop.f32.mrf.mxu1  ;;  %v1491_v25 = vpop.f32.mrf.mxu0 }
 0x165   :  { %2843 = vst [vmem:[#allocation9 + $0xa8] sm:$0xff] %v2838_v54  ;;  %v1361_v57 = vadd.f32 %v1360_v30, %v1312_v59  ;;  %v1417_v39 = vpop.f32.mrf.mxu2  ;;  %v1458_v49 = vpop.f32.mrf.mxu3 }
 0x167   :  { %v1418_v6 = vadd.f32 %v1417_v39, %v1361_v57  ;;  %2247 = vmatmul.f32.gmra.mxu1 %v3214_v32  ;;  %2394 = vmatmul.f32.vlgmr.msra.gmra.mxu0 %v3080_v28 }
 0x169   :  { %v1459_v8 = vadd.f32 %v1458_v49, %v1418_v6  ;;  %2565 = vmatmul.f32.vlgmr.msra.gmra.mxu3 %v3080_v28  ;;  %2480 = vmatmul.f32.vlgmr.msra.gmra.mxu2 %v3143_v62 }
 0x16b   :  { %v2840_v4 = vadd.f32 %v4133_v46, %v1459_v8 }
 0x16c   :  { %v1499_v29 = vpop.f32.mrf.mxu0  ;;  %v1576_v40 = vpop.f32.mrf.mxu1 }
 0x16d   :  { %2845 = vst [vmem:[#allocation9 + $0xb8] sm:$0xff] %v2840_v4  ;;  %v1626_v48 = vpop.f32.mrf.mxu2  ;;  %v1672_v5 = vpop.f32.mrf.mxu3 }
 0x16f   :  { %2398 = vmatmul.f32.gmra.mxu0 %v3132_v55  ;;  %2435 = vmatmul.f32.vlgmr.msra.gmra.mxu1 %v3080_v28 }
 0x171   :  { %2569 = vmatmul.f32.gmra.mxu3 %v3132_v55  ;;  %2488 = vmatmul.f32.gmra.mxu2 %v3212_v13  ;;  %v1577_v13 = vadd.f32 %v1576_v40, %v1491_v25 }
 0x173   :  { %v1627_v2 = vadd.f32 %v1626_v48, %v1577_v13 }
 0x174   :  { %v1507_v1 = vpop.f32.mrf.mxu0  ;;  %v1580_v18 = vpop.f32.mrf.mxu1 }
 0x175   :  { %v1631_v24 = vpop.f32.mrf.mxu2  ;;  %v1678_v34 = vpop.f32.mrf.mxu3  ;;  %v1581_v31 = vadd.f32 %v1580_v18, %v1499_v29 }
 0x177   :  { %2402 = vmatmul.f32.gmra.mxu0 %v3159_v12  ;;  %2439 = vmatmul.f32.gmra.mxu1 %v3132_v55  ;;  %v1632_v52 = vadd.f32 %v1631_v24, %v1581_v31 }
 0x179   :  { %2573 = vmatmul.f32.gmra.mxu3 %v3159_v12  ;;  %2496 = vmatmul.f32.gmra.mxu2 %v3255_v3  ;;  %v1673_v3 = vadd.f32 %v1672_v5, %v1627_v2 }
 0x17c   :  { %v1515_v62 = vpop.f32.mrf.mxu0  ;;  %v1584_v46 = vpop.f32.mrf.mxu1 }
 0x17d   :  { %v1636_v15 = vpop.f32.mrf.mxu2  ;;  %v1684_v35 = vpop.f32.mrf.mxu3  ;;  %v1585_v61 = vadd.f32 %v1584_v46, %v1507_v1 }
 0x17f   :  { %2406 = vmatmul.f32.gmra.mxu0 %v3214_v32  ;;  %2443 = vmatmul.f32.gmra.mxu1 %v3159_v12  ;;  %v1637_v9 = vadd.f32 %v1636_v15, %v1585_v61 }
 0x181   :  { %2577 = vmatmul.f32.gmra.mxu3 %v3214_v32  ;;  %2504 = vmatmul.f32.gmra.mxu2 %v3288_v20  ;;  %v4367_v20 = vstv %s2890_s29 }
 0x184   :  { %v1588_v21 = vpop.f32.mrf.mxu1  ;;  %v1735_v47 = vpop.f32.mrf.mxu0 }
 0x185   :  { %v1641_v63 = vpop.f32.mrf.mxu2  ;;  %v1690_v50 = vpop.f32.mrf.mxu3  ;;  %v1736_v51 = vadd.f32 %v1735_v47, %v1673_v3 }
 0x187   :  { %2447 = vmatmul.f32.gmra.mxu1 %v3214_v32  ;;  %2615 = vmatmul.f32.vlgmr.msrb.gmra.mxu0 %v3103_v37  ;;  %v1679_v37 = vadd.f32 %v1678_v34, %v1632_v52 }
 0x189   :  { %2765 = vmatmul.f32.vlgmr.msrb.gmra.mxu3 %v3080_v28  ;;  %2724 = vmatmul.f32.vlgmr.msrb.gmra.mxu2 %v3080_v28 }
 0x18c   :  { %v1739_v27 = vpop.f32.mrf.mxu0  ;;  %v1776_v58 = vpop.f32.mrf.mxu1 }
 0x18d   :  { %v1777_v26 = vadd.f32 %v1776_v58, %v1736_v51  ;;  %v1821_v33 = vpop.f32.mrf.mxu2  ;;  %v1906_v17 = vpop.f32.mrf.mxu3  ;;  %v1740_v28 = vadd.f32 %v1739_v27, %v1679_v37 }
 0x18e   :  { %v1907_v6 = vadd.f32 %v1906_v17, %v1821_v33 }
 0x18f   :  { %v2804_v41 = vadd.f32 %v4367_v20, %v1777_v26  ;;  %2620 = vmatmul.f32.gmra.mxu0 %v3147_v0  ;;  %2661 = vmatmul.f32.vlgmr.msrb.gmra.mxu1 %v3115_v45  ;;  %v1685_v45 = vadd.f32 %v1684_v35, %v1637_v9  ;;  %v1589_v0 = vadd.f32 %v1588_v21, %v1515_v62 }
 0x191   :  { %2809 = vst [vmem:[#allocation9 + $0x40] sm:$0xff] %v2804_v41  ;;  %2769 = vmatmul.f32.gmra.mxu3 %v3132_v55  ;;  %2728 = vmatmul.f32.gmra.mxu2 %v3132_v55  ;;  %v1642_v23 = vadd.f32 %v1641_v63, %v1589_v0 }
 0x194   :  { %v1743_v53 = vpop.f32.mrf.mxu0  ;;  %v1780_v19 = vpop.f32.mrf.mxu1 }
 0x195   :  { %v1781_v42 = vadd.f32 %v1780_v19, %v1740_v28  ;;  %v1829_v10 = vpop.f32.mrf.mxu2  ;;  %v1910_v38 = vpop.f32.mrf.mxu3  ;;  %v1744_v55 = vadd.f32 %v1743_v53, %v1685_v45 }
 0x197   :  { %v2806_v56 = vadd.f32 %v4367_v20, %v1781_v42  ;;  %2625 = vmatmul.f32.gmra.mxu0 %v3178_v36  ;;  %2667 = vmatmul.f32.gmra.mxu1 %v3167_v14  ;;  %v1691_v14 = vadd.f32 %v1690_v50, %v1642_v23 }
 0x199   :  { %2811 = vst [vmem:[#allocation9 + $0x50] sm:$0xff] %v2806_v56  ;;  %2773 = vmatmul.f32.gmra.mxu3 %v3159_v12  ;;  %2732 = vmatmul.f32.gmra.mxu2 %v3159_v12 }
 0x19c   :  { %v1747_v43 = vpop.f32.mrf.mxu0  ;;  %v1784_v44 = vpop.f32.mrf.mxu1 }
 0x19d   :  { %v1785_v11 = vadd.f32 %v1784_v44, %v1744_v55  ;;  %v1837_v22 = vpop.f32.mrf.mxu2  ;;  %v1914_v59 = vpop.f32.mrf.mxu3  ;;  %v1748_v12 = vadd.f32 %v1747_v43, %v1691_v14 }
 0x19e   :  { %v1915_v35 = vadd.f32 %v1914_v59, %v1837_v22 }
 0x19f   :  { %v2848_v54 = vadd.f32 %v4367_v20, %v1785_v11  ;;  %2630 = vmatmul.f32.gmra.mxu0 %v3238_v16  ;;  %2673 = vmatmul.f32.gmra.mxu1 %v3207_v7 }
 0x1a1   :  { %2853 = vst [vmem:[#allocation9 + $0xc0] sm:$0xff] %v2848_v54  ;;  %2777 = vmatmul.f32.gmra.mxu3 %v3214_v32  ;;  %2736 = vmatmul.f32.gmra.mxu2 %v3214_v32  ;;  %v1911_v32 = vadd.f32 %v1910_v38, %v1829_v10 }
 0x1a4   :  { %v1788_v36 = vpop.f32.mrf.mxu1  ;;  %v1956_v30 = vpop.f32.mrf.mxu0 }
 0x1a5   :  { %v1789_v25 = vadd.f32 %v1788_v36, %v1748_v12  ;;  %v1845_v57 = vpop.f32.mrf.mxu2  ;;  %v1918_v39 = vpop.f32.mrf.mxu3  ;;  %v1957_v16 = vadd.f32 %v1956_v30, %v1907_v6 }
 0x1a6   :  { %v1919_v27 = vadd.f32 %v1918_v39, %v1845_v57 }
 0x1a7   :  { %v2850_v49 = vadd.f32 %v4367_v20, %v1789_v25  ;;  %2679 = vmatmul.f32.gmra.mxu1 %v3259_v60 }
 0x1a9   :  { %2855 = vst [vmem:[#allocation9 + $0xd0] sm:$0xff] %v2850_v49  ;;  %v4390_v49 = vstv %s2891_s30 }
 0x1ac   :  { %v1961_v7 = vpop.f32.mrf.mxu0  ;;  %v2002_v8 = vpop.f32.mrf.mxu1 }
 0x1ad   :  { %v2003_v4 = vadd.f32 %v2002_v8, %v1957_v16  ;;  %v2065_v29 = vpop.f32.mrf.mxu2  ;;  %v2106_v40 = vpop.f32.mrf.mxu3  ;;  %v1962_v1 = vadd.f32 %v1961_v7, %v1911_v32 }
 0x1af   :  { %v2066_v48 = vadd.f32 %v2065_v29, %v2003_v4 }
 0x1b1   :  { %v2107_v5 = vadd.f32 %v2106_v40, %v2066_v48 }
 0x1b3   :  { %v2805_v18 = vadd.f32 %v4367_v20, %v2107_v5 }
 0x1b4   :  { %v1966_v24 = vpop.f32.mrf.mxu0  ;;  %v2008_v34 = vpop.f32.mrf.mxu1 }
 0x1b5   :  { %2810 = vst [vmem:[#allocation9 + $0x48] sm:$0xff] %v2805_v18  ;;  %v2009_v62 = vadd.f32 %v2008_v34, %v1962_v1  ;;  %v2069_v46 = vpop.f32.mrf.mxu2  ;;  %v2110_v60 = vpop.f32.mrf.mxu3  ;;  %v1967_v21 = vadd.f32 %v1966_v24, %v1915_v35 }
 0x1b7   :  { %v2070_v15 = vadd.f32 %v2069_v46, %v2009_v62 }
 0x1b9   :  { %v2111_v13 = vadd.f32 %v2110_v60, %v2070_v15 }
 0x1bb   :  { %v2807_v47 = vadd.f32 %v4367_v20, %v2111_v13 }
 0x1bc   :  { %v1971_v2 = vpop.f32.mrf.mxu0  ;;  %v2014_v63 = vpop.f32.mrf.mxu1 }
 0x1bd   :  { %2812 = vst [vmem:[#allocation9 + $0x58] sm:$0xff] %v2807_v47  ;;  %v2015_v50 = vadd.f32 %v2014_v63, %v1967_v21  ;;  %v2073_v3 = vpop.f32.mrf.mxu2  ;;  %v2114_v31 = vpop.f32.mrf.mxu3  ;;  %v1972_v52 = vadd.f32 %v1971_v2, %v1919_v27 }
 0x1bf   :  { %v2074_v51 = vadd.f32 %v2073_v3, %v2015_v50 }
 0x1c1   :  { %v2115_v58 = vadd.f32 %v2114_v31, %v2074_v51 }
 0x1c3   :  { %v2849_v26 = vadd.f32 %v4367_v20, %v2115_v58 }
 0x1c4   :  { %v2020_v33 = vpop.f32.mrf.mxu1  ;;  %v2151_v17 = vpop.f32.mrf.mxu0 }
 0x1c5   :  { %2854 = vst [vmem:[#allocation9 + $0xc8] sm:$0xff] %v2849_v26  ;;  %v2021_v41 = vadd.f32 %v2020_v33, %v1972_v52  ;;  %v2077_v37 = vpop.f32.mrf.mxu2  ;;  %v2118_v61 = vpop.f32.mrf.mxu3 }
 0x1c7   :  { %v2078_v28 = vadd.f32 %v2077_v37, %v2021_v41 }
 0x1c9   :  { %v2119_v53 = vadd.f32 %v2118_v61, %v2078_v28 }
 0x1cb   :  { %v2851_v19 = vadd.f32 %v4367_v20, %v2119_v53 }
 0x1cc   :  { %v2159_v9 = vpop.f32.mrf.mxu0  ;;  %v2236_v42 = vpop.f32.mrf.mxu1 }
 0x1cd   :  { %2856 = vst [vmem:[#allocation9 + $0xd8] sm:$0xff] %v2851_v19  ;;  %v2286_v10 = vpop.f32.mrf.mxu2  ;;  %v2332_v38 = vpop.f32.mrf.mxu3  ;;  %v2237_v22 = vadd.f32 %v2236_v42, %v2151_v17 }
 0x1cf   :  { %v2287_v14 = vadd.f32 %v2286_v10, %v2237_v22 }
 0x1d1   :  { %v2333_v36 = vadd.f32 %v2332_v38, %v2287_v14 }
 0x1d4   :  { %v2167_v56 = vpop.f32.mrf.mxu0  ;;  %v2240_v45 = vpop.f32.mrf.mxu1 }
 0x1d5   :  { %v2291_v0 = vpop.f32.mrf.mxu2  ;;  %v2338_v55 = vpop.f32.mrf.mxu3  ;;  %v2241_v30 = vadd.f32 %v2240_v45, %v2159_v9 }
 0x1d7   :  { %v2292_v6 = vadd.f32 %v2291_v0, %v2241_v30 }
 0x1d9   :  { %v2339_v29 = vadd.f32 %v2338_v55, %v2292_v6 }
 0x1dc   :  { %v2175_v43 = vpop.f32.mrf.mxu0  ;;  %v2244_v44 = vpop.f32.mrf.mxu1 }
 0x1dd   :  { %v2296_v23 = vpop.f32.mrf.mxu2  ;;  %v2344_v11 = vpop.f32.mrf.mxu3  ;;  %v2245_v40 = vadd.f32 %v2244_v44, %v2167_v56 }
 0x1df   :  { %v2297_v1 = vadd.f32 %v2296_v23, %v2245_v40 }
 0x1e1   :  { %v2345_v46 = vadd.f32 %v2344_v11, %v2297_v1 }
 0x1e4   :  { %v2248_v59 = vpop.f32.mrf.mxu1  ;;  %v2395_v54 = vpop.f32.mrf.mxu0 }
 0x1e5   :  { %v2301_v12 = vpop.f32.mrf.mxu2  ;;  %v2350_v20 = vpop.f32.mrf.mxu3  ;;  %v2396_v25 = vadd.f32 %v2395_v54, %v2333_v36  ;;  %v2249_v60 = vadd.f32 %v2248_v59, %v2175_v43 }
 0x1e7   :  { %v2302_v21 = vadd.f32 %v2301_v12, %v2249_v60 }
 0x1e9   :  { %v2351_v3 = vadd.f32 %v2350_v20, %v2302_v21 }
 0x1ec   :  { %v2399_v57 = vpop.f32.mrf.mxu0  ;;  %v2436_v39 = vpop.f32.mrf.mxu1 }
 0x1ed   :  { %v2437_v16 = vadd.f32 %v2436_v39, %v2396_v25  ;;  %v2481_v7 = vpop.f32.mrf.mxu2  ;;  %v2566_v8 = vpop.f32.mrf.mxu3  ;;  %v2400_v48 = vadd.f32 %v2399_v57, %v2339_v29 }
 0x1ee   :  { %v2567_v17 = vadd.f32 %v2566_v8, %v2481_v7 }
 0x1ef   :  { %v2815_v4 = vadd.f32 %v4390_v49, %v2437_v16 }
 0x1f1   :  { %2820 = vst [vmem:[#allocation9 + $0x60] sm:$0xff] %v2815_v4 }
 0x1f4   :  { %v2403_v32 = vpop.f32.mrf.mxu0  ;;  %v2440_v5 = vpop.f32.mrf.mxu1 }
 0x1f5   :  { %v2441_v18 = vadd.f32 %v2440_v5, %v2400_v48  ;;  %v2489_v24 = vpop.f32.mrf.mxu2  ;;  %v2570_v34 = vpop.f32.mrf.mxu3  ;;  %v2404_v15 = vadd.f32 %v2403_v32, %v2345_v46 }
 0x1f6   :  { %v2571_v42 = vadd.f32 %v2570_v34, %v2489_v24 }
 0x1f7   :  { %v2817_v62 = vadd.f32 %v4390_v49, %v2441_v18 }
 0x1f9   :  { %2822 = vst [vmem:[#allocation9 + $0x70] sm:$0xff] %v2817_v62 }
 0x1fc   :  { %v2407_v35 = vpop.f32.mrf.mxu0  ;;  %v2444_v13 = vpop.f32.mrf.mxu1 }
 0x1fd   :  { %v2445_v47 = vadd.f32 %v2444_v13, %v2404_v15  ;;  %v2497_v2 = vpop.f32.mrf.mxu2  ;;  %v2574_v63 = vpop.f32.mrf.mxu3  ;;  %v2408_v31 = vadd.f32 %v2407_v35, %v2351_v3 }
 0x1fe   :  { %v2575_v11 = vadd.f32 %v2574_v63, %v2497_v2 }
 0x1ff   :  { %v2859_v50 = vadd.f32 %v4390_v49, %v2445_v47 }
 0x201   :  { %2864 = vst [vmem:[#allocation9 + $0xe0] sm:$0xff] %v2859_v50 }
 0x204   :  { %v2448_v51 = vpop.f32.mrf.mxu1  ;;  %v2616_v27 = vpop.f32.mrf.mxu0 }
 0x205   :  { %v2449_v58 = vadd.f32 %v2448_v51, %v2408_v31  ;;  %v2505_v52 = vpop.f32.mrf.mxu2  ;;  %v2578_v26 = vpop.f32.mrf.mxu3  ;;  %v2617_v41 = vadd.f32 %v2616_v27, %v2567_v17 }
 0x206   :  { %v2579_v57 = vadd.f32 %v2578_v26, %v2505_v52 }
 0x207   :  { %v2861_v33 = vadd.f32 %v4390_v49, %v2449_v58 }
 0x209   :  { %2866 = vst [vmem:[#allocation9 + $0xf0] sm:$0xff] %v2861_v33 }
 0x20c   :  { %v2621_v37 = vpop.f32.mrf.mxu0  ;;  %v2662_v61 = vpop.f32.mrf.mxu1 }
 0x20d   :  { %v2663_v28 = vadd.f32 %v2662_v61, %v2617_v41  ;;  %v2725_v53 = vpop.f32.mrf.mxu2  ;;  %v2766_v19 = vpop.f32.mrf.mxu3  ;;  %v2622_v38 = vadd.f32 %v2621_v37, %v2571_v42 }
 0x20f   :  { %v2726_v9 = vadd.f32 %v2725_v53, %v2663_v28 }
 0x211   :  { %v2767_v10 = vadd.f32 %v2766_v19, %v2726_v9 }
 0x213   :  { %v2816_v56 = vadd.f32 %v4390_v49, %v2767_v10 }
 0x214   :  { %v2668_v45 = vpop.f32.mrf.mxu1  ;;  %v2626_v44 = vpop.f32.mrf.mxu0 }
 0x215   :  { %2821 = vst [vmem:[#allocation9 + $0x68] sm:$0xff] %v2816_v56  ;;  %v2669_v0 = vadd.f32 %v2668_v45, %v2622_v38  ;;  %v2729_v55 = vpop.f32.mrf.mxu2  ;;  %v2770_v43 = vpop.f32.mrf.mxu3  ;;  %v2627_v59 = vadd.f32 %v2626_v44, %v2575_v11 }
 0x217   :  { %v2730_v23 = vadd.f32 %v2729_v55, %v2669_v0 }
 0x219   :  { %v2771_v22 = vadd.f32 %v2770_v43, %v2730_v23 }
 0x21b   :  { %v2818_v54 = vadd.f32 %v4390_v49, %v2771_v22 }
 0x21c   :  { %v2674_v14 = vpop.f32.mrf.mxu1  ;;  %v2631_v25 = vpop.f32.mrf.mxu0 }
 0x21d   :  { %2823 = vst [vmem:[#allocation9 + $0x78] sm:$0xff] %v2818_v54  ;;  %v2675_v12 = vadd.f32 %v2674_v14, %v2627_v59  ;;  %v2733_v20 = vpop.f32.mrf.mxu2  ;;  %v2774_v36 = vpop.f32.mrf.mxu3  ;;  %v2632_v6 = vadd.f32 %v2631_v25, %v2579_v57 }
 0x21f   :  { %v2734_v30 = vadd.f32 %v2733_v20, %v2675_v12 }
 0x221   :  { %v2775_v39 = vadd.f32 %v2774_v36, %v2734_v30 }
 0x223   :  { %v2860_v16 = vadd.f32 %v4390_v49, %v2775_v39 }
 0x224   :  { %v2680_v7 = vpop.f32.mrf.mxu1 }
 0x225   :  { %2865 = vst [vmem:[#allocation9 + $0xe8] sm:$0xff] %v2860_v16  ;;  %v2681_v8 = vadd.f32 %v2680_v7, %v2632_v6  ;;  %v2737_v4 = vpop.f32.mrf.mxu2  ;;  %v2778_v29 = vpop.f32.mrf.mxu3 }
 0x227   :  { %v2738_v40 = vadd.f32 %v2737_v4, %v2681_v8 }
 0x229   :  { %v2779_v48 = vadd.f32 %v2778_v29, %v2738_v40 }
 0x22b   :  { %v2862_v32 = vadd.f32 %v4390_v49, %v2779_v48 }
 0x22d   :  { %2867 = vst [vmem:[#allocation9 + $0xf8] sm:$0xff] %v2862_v32 }
 0x22e   :  { %2880 = dma.vmem_to_hbm [thread:$0]  %s2873_s5, 4096, %s2875_s8, [#allocation4], %s3005_s9, %s3005_s9, %s3006_s10  }
 0x22f   :  { %2995 = dma.done.wait [#allocation4], 4096  }
 0x230   :  { %2996 = vsyncadd [#allocation4], 4294963200 }
 0x231   :  { %2885 = vsyncpa [#allocation3], 1 }
 0x232   :  { %2886 = vsyncpa [#allocation8], 1 }
 0x233   :  { %2887 = vsyncpa [#allocation4], 1 }
 0x234   :  { %2888 = vsyncpa [#allocation5], 1 }

</bundles_post_ra>
